<compile_context>
chip_gen: v7x
topology: tpu7x:2x2x1
jax: 0.10.0
libtpu: 0.0.40
codegen_flags: <defaults>
</compile_context>

<pallas_src>
import functools

import jax
import jax.numpy as jnp
from jax import lax
from jax.experimental import pallas as pl
from jax.experimental.pallas import tpu as pltpu


def _triplet_tile_kernel(margin,
                         emb_r_ref, emb_c_ref,
                         sq_r_ref, sq_c_ref,
                         tgt_r_ref, tgt_c_ref,
                         rvalid_ref, cvalid_ref,
                         out_ref,
                         ap2_ref, an2_ref):
    j = pl.program_id(1)

    @pl.when(j == 0)
    def _():
        ap2_ref[...] = jnp.full_like(ap2_ref, -jnp.inf)
        an2_ref[...] = jnp.full_like(an2_ref, jnp.inf)

    # Gram tile on the MXU, contracting the feature dim of BOTH operands
    # directly (no transpose of the column tile through the XLU).
    gram = lax.dot_general(
        emb_r_ref[...], emb_c_ref[...],
        dimension_numbers=(((1,), (1,)), ((), ())),
        preferred_element_type=jnp.float32)                      # [TM, TN]

    # Squared euclidean distances for this tile (pre-oriented norm vectors).
    d2 = sq_r_ref[...] + sq_c_ref[...] - 2.0 * gram              # [TM, TN]

    # Label masks, boolean (row targets [TM,1] vs lane-dense col targets [1,TN]).
    same = tgt_r_ref[...] == tgt_c_ref[...]                      # [TM, TN]
    cvalid = cvalid_ref[...] > 0.5                               # [1, TN]
    is_pos = jnp.logical_and(same, cvalid)
    is_neg = jnp.logical_and(jnp.logical_not(same), cvalid)

    # Running hardest positive / hardest negative on squared distances.
    ap2_ref[...] = jnp.maximum(
        ap2_ref[...],
        jnp.max(jnp.where(is_pos, d2, -jnp.inf), axis=1, keepdims=True))
    an2_ref[...] = jnp.minimum(
        an2_ref[...],
        jnp.min(jnp.where(is_neg, d2, jnp.inf), axis=1, keepdims=True))

    @pl.when(j == pl.num_programs(1) - 1)
    def _():
        # sqrt hoisted off the [TM,TN] tile: monotone, so it commutes with
        # max/min; clamp matches torch's clamp(min=1e-12).sqrt().
        dist_ap = jnp.sqrt(jnp.maximum(ap2_ref[...], 1e-12))     # [TM, 1]
        dist_an = jnp.sqrt(jnp.maximum(an2_ref[...], 1e-12))     # [TM, 1]
        per_anchor = jnp.maximum(dist_ap - dist_an + margin, 0.0)
        out_ref[...] = per_anchor * rvalid_ref[...]              # zero padded rows


def triplet_loss_pallas(embedding, targets, margin=0.3, loss_weight=1.0):
    """embedding: [N, D] (f32 or bf16), targets: [N] int -> scalar f32 loss."""
    n, d = embedding.shape
    # 128-aligned tiles run full cadence on every generation (v5e MXU 4x128^2);
    # 256 tiles for large batches favor v6e/v7x (2x256^2 MXU) while staying
    # tiny vs. every chip's VMEM budget (incl. v7x's 64 MiB).
    t = 256 if n >= 1024 else 128
    n_pad = pl.cdiv(n, t) * t

    x = embedding                               # keep native dtype for DMA
    if n_pad != n:
        x = jnp.pad(x, ((0, n_pad - n), (0, 0)))
    tgt = jnp.pad(targets.astype(jnp.int32), (0, n_pad - n), constant_values=-1)
    valid = (jnp.arange(n_pad) < n).astype(jnp.float32)
    sq = jnp.sum(x.astype(jnp.float32) * x.astype(jnp.float32), axis=1)

    sq_r = sq.reshape(n_pad, 1)
    sq_c = sq.reshape(1, n_pad)
    tgt_r = tgt.reshape(n_pad, 1)
    tgt_c = tgt.reshape(1, n_pad)
    rvalid = valid.reshape(n_pad, 1)
    cvalid = valid.reshape(1, n_pad)

    grid = (n_pad // t, n_pad // t)
    itemsize = jnp.dtype(x.dtype).itemsize

    per_anchor = pl.pallas_call(
        functools.partial(_triplet_tile_kernel, float(margin)),
        out_shape=jax.ShapeDtypeStruct((n_pad, 1), jnp.float32),
        grid_spec=pltpu.PrefetchScalarGridSpec(
            num_scalar_prefetch=0,
            grid=grid,
            in_specs=[
                pl.BlockSpec((t, d), lambda i, j: (i, 0)),   # row embedding tile
                pl.BlockSpec((t, d), lambda i, j: (j, 0)),   # col embedding tile
                pl.BlockSpec((t, 1), lambda i, j: (i, 0)),   # row squared norms
                pl.BlockSpec((1, t), lambda i, j: (0, j)),   # col squared norms
                pl.BlockSpec((t, 1), lambda i, j: (i, 0)),   # row targets
                pl.BlockSpec((1, t), lambda i, j: (0, j)),   # col targets
                pl.BlockSpec((t, 1), lambda i, j: (i, 0)),   # row validity
                pl.BlockSpec((1, t), lambda i, j: (0, j)),   # col validity
            ],
            out_specs=pl.BlockSpec((t, 1), lambda i, j: (i, 0)),
            scratch_shapes=[
                pltpu.VMEM((t, 1), jnp.float32),   # running max d^2 (positives)
                pltpu.VMEM((t, 1), jnp.float32),   # running min d^2 (negatives)
            ],
        ),
        compiler_params=pltpu.CompilerParams(
            dimension_semantics=("parallel", "arbitrary")),
        cost_estimate=pl.CostEstimate(
            flops=2 * n_pad * n_pad * d + 8 * n_pad * n_pad,
            transcendentals=2 * n_pad,
            bytes_accessed=2 * n_pad * d * itemsize * (n_pad // t)
                           + 6 * n_pad * 4 + n_pad * 4),
    )(x, x, sq_r, sq_c, tgt_r, tgt_c, rvalid, cvalid)

    # reduction='mean' over the true N anchors (padded rows already zeroed).
    return loss_weight * jnp.sum(per_anchor) / n


def _reference(embedding, targets, margin=0.3, loss_weight=1.0):
    # Pure-JAX mirror of the PyTorch code (hard mining, euclidean, mean).
    x = embedding.astype(jnp.float32)
    gram = jnp.matmul(x, x.T, precision=lax.Precision.HIGHEST)
    sq = jnp.sum(x * x, axis=1, keepdims=True)
    dist2 = sq + sq.T - 2.0 * gram
    dist = jnp.sqrt(jnp.maximum(dist2, 1e-12))
    t = targets.reshape(-1, 1)
    is_pos = (t == t.T).astype(jnp.float32)
    is_neg = (t != t.T).astype(jnp.float32)
    dist_ap = jnp.max(dist * is_pos, axis=1)
    dist_an = jnp.min(dist * is_neg + is_pos * 99999999.0, axis=1)
    return loss_weight * jnp.mean(jnp.maximum(dist_ap - dist_an + margin, 0.0))


if __name__ == "__main__":
    key = jax.random.PRNGKey(0)
    k1, k2, k3 = jax.random.split(key, 3)

    # Case 1: small ReID-style batch — 4 classes x 2 samples, D=32, grid (1,1).
    emb1 = jax.random.normal(k1, (8, 32), dtype=jnp.float32)
    tgt1 = jnp.array([0, 0, 1, 1, 2, 2, 3, 3], dtype=jnp.int32)
    loss1 = jax.jit(triplet_loss_pallas)(emb1, tgt1)
    jax.block_until_ready(loss1)
    ref1 = _reference(emb1, tgt1)
    assert jnp.allclose(loss1, ref1, atol=1e-4, rtol=1e-4), (loss1, ref1)

    # Case 2: exercises the multi-tile grid + padding/masking path
    # (N=160 pads to 256 with t=128 -> grid=(2,2)).
    emb2 = jax.random.normal(k2, (160, 48), dtype=jnp.float32)
    tgt2 = jax.random.randint(k3, (160,), 0, 4, dtype=jnp.int32)
    loss2 = jax.jit(triplet_loss_pallas)(emb2, tgt2)
    jax.block_until_ready(loss2)
    ref2 = _reference(emb2, tgt2)
    assert jnp.allclose(loss2, ref2, atol=1e-4, rtol=1e-4), (loss2, ref2)

    # TODO(synk): norm_feat=True (cosine_dist), hard_mining=False
    # (weighted_example_mining) and the margin<=0 soft-margin branch are
    # non-default configs and are not implemented in this kernel.

    print("KERNEL_OK")
</pallas_src>

<mosaic_0001>
module attributes {stable_mosaic.version = 11 : i64} {
  func.func @_triplet_tile_kernel(%arg0: i32, %arg1: i32, %arg2: memref<128x32xf32, #tpu.memory_space<vmem>>, %arg3: memref<128x32xf32, #tpu.memory_space<vmem>>, %arg4: memref<128x1xf32, #tpu.memory_space<vmem>>, %arg5: memref<1x128xf32, #tpu.memory_space<vmem>>, %arg6: memref<128x1xi32, #tpu.memory_space<vmem>>, %arg7: memref<1x128xi32, #tpu.memory_space<vmem>>, %arg8: memref<128x1xf32, #tpu.memory_space<vmem>>, %arg9: memref<1x128xf32, #tpu.memory_space<vmem>>, %arg10: memref<128x1xf32, #tpu.memory_space<vmem>>, %arg11: memref<128x1xf32, #tpu.memory_space<vmem>>, %arg12: memref<128x1xf32, #tpu.memory_space<vmem>>) attributes {dimension_semantics = [#tpu.dimension_semantics<parallel>, #tpu.dimension_semantics<arbitrary>], iteration_bounds = array<i64: 1, 1>, scalar_prefetch = 0 : i64, scratch_operands = 2 : i64, tpu.core_type = #tpu.core_type<tc>, window_params = [{transform_indices = @transform_0, window_bounds = array<i64: 128, 32>}, {transform_indices = @transform_1, window_bounds = array<i64: 128, 32>}, {transform_indices = @transform_2, window_bounds = array<i64: 128, 1>}, {transform_indices = @transform_3, window_bounds = array<i64: 1, 128>}, {transform_indices = @transform_4, window_bounds = array<i64: 128, 1>}, {transform_indices = @transform_5, window_bounds = array<i64: 1, 128>}, {transform_indices = @transform_6, window_bounds = array<i64: 128, 1>}, {transform_indices = @transform_7, window_bounds = array<i64: 1, 128>}, {transform_indices = @transform_8, window_bounds = array<i64: 128, 1>}]} {
    %c0_i32 = arith.constant 0 : i32
    %0 = arith.cmpi eq, %arg1, %c0_i32 : i32
    %1 = arith.extui %0 : i1 to i32
    %c0_i32_0 = arith.constant 0 : i32
    %2 = arith.cmpi ne, %1, %c0_i32_0 : i32
    scf.if %2 {
      %cst_31 = arith.constant 0xFF800000 : f32
      %44 = vector.broadcast %cst_31 : f32 to vector<128x1xf32>
      %c0_32 = arith.constant 0 : index
      %c0_33 = arith.constant 0 : index
      %45 = vector.load %arg11[%c0_32, %c0_33] : memref<128x1xf32, #tpu.memory_space<vmem>>, vector<128x1xf32>
      tpu.vector_store %arg11[%c0_32, %c0_33], %44 {strides = array<i32>} : memref<128x1xf32, #tpu.memory_space<vmem>>, vector<128x1xf32>,
      %cst_34 = arith.constant 0x7F800000 : f32
      %46 = vector.broadcast %cst_34 : f32 to vector<128x1xf32>
      %c0_35 = arith.constant 0 : index
      %c0_36 = arith.constant 0 : index
      %47 = vector.load %arg12[%c0_35, %c0_36] : memref<128x1xf32, #tpu.memory_space<vmem>>, vector<128x1xf32>
      tpu.vector_store %arg12[%c0_35, %c0_36], %46 {strides = array<i32>} : memref<128x1xf32, #tpu.memory_space<vmem>>, vector<128x1xf32>,
    } else {
    }
    %c0 = arith.constant 0 : index
    %c0_1 = arith.constant 0 : index
    %3 = vector.load %arg2[%c0, %c0_1] : memref<128x32xf32, #tpu.memory_space<vmem>>, vector<128x32xf32>
    %c0_2 = arith.constant 0 : index
    %c0_3 = arith.constant 0 : index
    %4 = vector.load %arg3[%c0_2, %c0_3] : memref<128x32xf32, #tpu.memory_space<vmem>>, vector<128x32xf32>
    %cst = arith.constant dense<0.000000e+00> : vector<128x128xf32>
    %5 = tpu.matmul %3, %4, %cst {dimension_numbers = #tpu.dot_dimension_numbers<[1], [1], [0], [0], [0, 0, 1, 0], [], []>} : vector<128x32xf32>, vector<128x32xf32>, vector<128x128xf32> -> vector<128x128xf32>
    %c0_4 = arith.constant 0 : index
    %c0_5 = arith.constant 0 : index
    %6 = vector.load %arg4[%c0_4, %c0_5] : memref<128x1xf32, #tpu.memory_space<vmem>>, vector<128x1xf32>
    %c0_6 = arith.constant 0 : index
    %c0_7 = arith.constant 0 : index
    %7 = vector.load %arg5[%c0_6, %c0_7] : memref<1x128xf32, #tpu.memory_space<vmem>>, vector<1x128xf32>
    %8 = vector.broadcast %6 : vector<128x1xf32> to vector<128x128xf32>
    %9 = vector.broadcast %7 : vector<1x128xf32> to vector<128x128xf32>
    %10 = arith.addf %8, %9 : vector<128x128xf32>
    %cst_8 = arith.constant 2.000000e+00 : f32
    %11 = vector.broadcast %cst_8 : f32 to vector<128x128xf32>
    %12 = arith.mulf %11, %5 : vector<128x128xf32>
    %13 = arith.subf %10, %12 : vector<128x128xf32>
    %c0_9 = arith.constant 0 : index
    %c0_10 = arith.constant 0 : index
    %14 = vector.load %arg6[%c0_9, %c0_10] : memref<128x1xi32, #tpu.memory_space<vmem>>, vector<128x1xi32>
    %c0_11 = arith.constant 0 : index
    %c0_12 = arith.constant 0 : index
    %15 = vector.load %arg7[%c0_11, %c0_12] : memref<1x128xi32, #tpu.memory_space<vmem>>, vector<1x128xi32>
    %16 = vector.broadcast %14 : vector<128x1xi32> to vector<128x128xi32>
    %17 = vector.broadcast %15 : vector<1x128xi32> to vector<128x128xi32>
    %18 = arith.cmpi eq, %16, %17 : vector<128x128xi32>
    %c0_13 = arith.constant 0 : index
    %c0_14 = arith.constant 0 : index
    %19 = vector.load %arg9[%c0_13, %c0_14] : memref<1x128xf32, #tpu.memory_space<vmem>>, vector<1x128xf32>
    %cst_15 = arith.constant 5.000000e-01 : f32
    %20 = vector.broadcast %cst_15 : f32 to vector<1x128xf32>
    %21 = arith.cmpf ogt, %19, %20 : vector<1x128xf32>
    %22 = vector.broadcast %21 : vector<1x128xi1> to vector<128x128xi1>
    %23 = arith.andi %18, %22 : vector<128x128xi1>
    %cst_16 = arith.constant dense<true> : vector<128x128xi1>
    %24 = arith.xori %18, %cst_16 : vector<128x128xi1>
    %25 = vector.broadcast %21 : vector<1x128xi1> to vector<128x128xi1>
    %26 = arith.andi %24, %25 : vector<128x128xi1>
    %c0_17 = arith.constant 0 : index
    %c0_18 = arith.constant 0 : index
    %27 = vector.load %arg11[%c0_17, %c0_18] : memref<128x1xf32, #tpu.memory_space<vmem>>, vector<128x1xf32>
    %cst_19 = arith.constant 0xFF800000 : f32
    %28 = vector.broadcast %cst_19 : f32 to vector<128x128xf32>
    %29 = arith.select %23, %13, %28 : vector<128x128xi1>, vector<128x128xf32>
    %cst_20 = arith.constant dense<0xFF800000> : vector<128xf32>
    %30 = vector.multi_reduction <maximumf>, %29, %cst_20 [1] : vector<128x128xf32> to vector<128xf32>
    %31 = vector.shape_cast %30 : vector<128xf32> to vector<128x1xf32>
    %32 = arith.maximumf %27, %31 : vector<128x1xf32>
    %c0_21 = arith.constant 0 : index
    %c0_22 = arith.constant 0 : index
    %33 = vector.load %arg11[%c0_21, %c0_22] : memref<128x1xf32, #tpu.memory_space<vmem>>, vector<128x1xf32>
    tpu.vector_store %arg11[%c0_21, %c0_22], %32 {strides = array<i32>} : memref<128x1xf32, #tpu.memory_space<vmem>>, vector<128x1xf32>,
    %c0_23 = arith.constant 0 : index
    %c0_24 = arith.constant 0 : index
    %34 = vector.load %arg12[%c0_23, %c0_24] : memref<128x1xf32, #tpu.memory_space<vmem>>, vector<128x1xf32>
    %cst_25 = arith.constant 0x7F800000 : f32
    %35 = vector.broadcast %cst_25 : f32 to vector<128x128xf32>
    %36 = arith.select %26, %13, %35 : vector<128x128xi1>, vector<128x128xf32>
    %cst_26 = arith.constant dense<0x7F800000> : vector<128xf32>
    %37 = vector.multi_reduction <minimumf>, %36, %cst_26 [1] : vector<128x128xf32> to vector<128xf32>
    %38 = vector.shape_cast %37 : vector<128xf32> to vector<128x1xf32>
    %39 = arith.minimumf %34, %38 : vector<128x1xf32>
    %c0_27 = arith.constant 0 : index
    %c0_28 = arith.constant 0 : index
    %40 = vector.load %arg12[%c0_27, %c0_28] : memref<128x1xf32, #tpu.memory_space<vmem>>, vector<128x1xf32>
    tpu.vector_store %arg12[%c0_27, %c0_28], %39 {strides = array<i32>} : memref<128x1xf32, #tpu.memory_space<vmem>>, vector<128x1xf32>,
    %c0_i32_29 = arith.constant 0 : i32
    %41 = arith.cmpi eq, %arg1, %c0_i32_29 : i32
    %42 = arith.extui %41 : i1 to i32
    %c0_i32_30 = arith.constant 0 : i32
    %43 = arith.cmpi ne, %42, %c0_i32_30 : i32
    scf.if %43 {
      %c0_31 = arith.constant 0 : index
      %c0_32 = arith.constant 0 : index
      %44 = vector.load %arg11[%c0_31, %c0_32] : memref<128x1xf32, #tpu.memory_space<vmem>>, vector<128x1xf32>
      %cst_33 = arith.constant 9.99999996E-13 : f32
      %45 = vector.broadcast %cst_33 : f32 to vector<128x1xf32>
      %46 = arith.maximumf %44, %45 : vector<128x1xf32>
      %47 = math.sqrt %46 : vector<128x1xf32>
      %c0_34 = arith.constant 0 : index
      %c0_35 = arith.constant 0 : index
      %48 = vector.load %arg12[%c0_34, %c0_35] : memref<128x1xf32, #tpu.memory_space<vmem>>, vector<128x1xf32>
      %cst_36 = arith.constant 9.99999996E-13 : f32
      %49 = vector.broadcast %cst_36 : f32 to vector<128x1xf32>
      %50 = arith.maximumf %48, %49 : vector<128x1xf32>
      %51 = math.sqrt %50 : vector<128x1xf32>
      %52 = arith.subf %47, %51 : vector<128x1xf32>
      %cst_37 = arith.constant 3.000000e-01 : f32
      %53 = vector.broadcast %cst_37 : f32 to vector<128x1xf32>
      %54 = arith.addf %52, %53 : vector<128x1xf32>
      %cst_38 = arith.constant 0.000000e+00 : f32
      %55 = vector.broadcast %cst_38 : f32 to vector<128x1xf32>
      %56 = arith.maximumf %54, %55 : vector<128x1xf32>
      %c0_39 = arith.constant 0 : index
      %c0_40 = arith.constant 0 : index
      %57 = vector.load %arg8[%c0_39, %c0_40] : memref<128x1xf32, #tpu.memory_space<vmem>>, vector<128x1xf32>
      %58 = arith.mulf %56, %57 : vector<128x1xf32>
      %c0_41 = arith.constant 0 : index
      %c0_42 = arith.constant 0 : index
      %59 = vector.load %arg10[%c0_41, %c0_42] : memref<128x1xf32, #tpu.memory_space<vmem>>, vector<128x1xf32>
      tpu.vector_store %arg10[%c0_41, %c0_42], %58 {strides = array<i32>} : memref<128x1xf32, #tpu.memory_space<vmem>>, vector<128x1xf32>,
    } else {
    }
    return
  }
  func.func @transform_0(%arg0: i32, %arg1: i32) -> (i32, i32) {
    %c0_i32 = arith.constant 0 : i32
    %c0_i32_0 = arith.constant 0 : i32
    return %arg0, %c0_i32 : i32, i32
  }
  func.func @transform_1(%arg0: i32, %arg1: i32) -> (i32, i32) {
    %c0_i32 = arith.constant 0 : i32
    %c0_i32_0 = arith.constant 0 : i32
    return %arg1, %c0_i32 : i32, i32
  }
  func.func @transform_2(%arg0: i32, %arg1: i32) -> (i32, i32) {
    %c0_i32 = arith.constant 0 : i32
    %c0_i32_0 = arith.constant 0 : i32
    return %arg0, %c0_i32 : i32, i32
  }
  func.func @transform_3(%arg0: i32, %arg1: i32) -> (i32, i32) {
    %c0_i32 = arith.constant 0 : i32
    %c0_i32_0 = arith.constant 0 : i32
    return %c0_i32, %arg1 : i32, i32
  }
  func.func @transform_4(%arg0: i32, %arg1: i32) -> (i32, i32) {
    %c0_i32 = arith.constant 0 : i32
    %c0_i32_0 = arith.constant 0 : i32
    return %arg0, %c0_i32 : i32, i32
  }
  func.func @transform_5(%arg0: i32, %arg1: i32) -> (i32, i32) {
    %c0_i32 = arith.constant 0 : i32
    %c0_i32_0 = arith.constant 0 : i32
    return %c0_i32, %arg1 : i32, i32
  }
  func.func @transform_6(%arg0: i32, %arg1: i32) -> (i32, i32) {
    %c0_i32 = arith.constant 0 : i32
    %c0_i32_0 = arith.constant 0 : i32
    return %arg0, %c0_i32 : i32, i32
  }
  func.func @transform_7(%arg0: i32, %arg1: i32) -> (i32, i32) {
    %c0_i32 = arith.constant 0 : i32
    %c0_i32_0 = arith.constant 0 : i32
    return %c0_i32, %arg1 : i32, i32
  }
  func.func @transform_8(%arg0: i32, %arg1: i32) -> (i32, i32) {
    %c0_i32 = arith.constant 0 : i32
    %c0_i32_0 = arith.constant 0 : i32
    return %arg0, %c0_i32 : i32, i32
  }
}

</mosaic_0001>

<bundles_post_ra>
// kernel: triplet_loss_pallas.1
= control target key start
LH: loop header
LB: loop body
LE: loop exit
PB: predicated region body
PF: predicated region fallthrough
CT: control target
= control target key end

     0   :  { %vm98_vm0 = vcmask 261120   ;;  %v1472_v3 = vmov 0   ;;  %vm3036_vm2 = vcmask 7168   ;;  %vm3044_vm7 = vmmov 1   ;;  %s3027_s1 = inlined_call_operand.vmem [shape: f32[128,32], index: 1, kind: input, shape index: {}, may-alias: {0,1}]   ;;  %s3028_s2 = inlined_call_operand.vmem [shape: f32[128,1], index: 2, kind: input, shape index: {}]   ;;  %s3029_s0 = inlined_call_operand.vmem [shape: f32[128,32], index: 0, kind: input, shape index: {}, may-alias: {0,1}]   ;;  %s3030_s4 = inlined_call_operand.vmem [shape: s32[128,1], index: 4, kind: input, shape index: {}]   ;;  %s3031_s7 = inlined_call_operand.vmem [shape: f32[1,128], index: 7, kind: input, shape index: {}]   ;;  %s3032_s5 = inlined_call_operand.vmem [shape: s32[1,128], index: 5, kind: input, shape index: {}]   ;;  %s3033_s3 = inlined_call_operand.vmem [shape: f32[1,128], index: 3, kind: input, shape index: {}]   ;;  %s3034_s6 = inlined_call_operand.vmem [shape: f32[128,1], index: 6, kind: input, shape index: {}]   ;;  %s3035_s8 = inlined_call_operand.vmem [shape: f32[128,1], index: 8, kind: output, shape index: {}]  }
   0x1   :  { %v82_v0 = vld [vmem:[%s3027_s1] sm:$0xff]  ;;  %v83_v1 = vld [vmem:[%s3027_s1 + $0x8] sm:$0xff]  ;;  %vm1529_vm1 = vmpackc.low %vm98_vm0, %vm98_vm0  ;;  %1407 = vset.pattern.permute.xlu1 %v1472_v3  ;;  %1406 = vset.pattern.permute.xlu0 %v1472_v3 }
   0x2   :  { %v1338_v4 = vpack.c.bf16 %v83_v1, %v82_v0  ;;  %v84_v5 = vld [vmem:[%s3027_s1 + $0x10] sm:$0xff]  ;;  %v85_v6 = vld [vmem:[%s3027_s1 + $0x18] sm:$0xff]  ;;  %v86_v9 = vld [vmem:[%s3027_s1 + $0x20] sm:$0xff] }
   0x3   :  { %v1344_v7 = vpack.c.bf16 %v85_v6, %v84_v5  ;;  %v342_v8 = vld [vmem:[%s3028_s2 + $0x10] sm:$0xff]  ;;  %v87_v10 = vld [vmem:[%s3027_s1 + $0x28] sm:$0xff]  ;;  %v340_v11 = vld [vmem:[%s3028_s2] sm:$0xff] }
   0x4   :  { %1340 = vmatprep.subr.msk.bf16.mxu0 %vm1529_vm1, %v1338_v4  ;;  %1386 = vmatprep.subr.msk.bf16.mxu1 %vm1529_vm1, %v1338_v4  ;;  %v343_v12 = vld [vmem:[%s3028_s2 + $0x18] sm:$0xff]  ;;  %v341_v13 = vld [vmem:[%s3028_s2 + $0x8] sm:$0xff]  ;;  %v1350_v14 = vpack.c.bf16 %v87_v10, %v86_v9  ;;  %v66_v15 = vld [vmem:[%s3029_s0] sm:$0xff] }
   0x5   :  { %1343 = vmatpush3.bf16.xpose.msk.msra.mxu0 %vm1529_vm1, %v1338_v4  ;;  %1394 = vmatpush3.bf16.xpose.msk.msra.mxu1 %vm1529_vm1, %v1338_v4  ;;  %v74_v16 = vld [vmem:[%s3029_s0 + $0x40] sm:$0xff]  ;;  %v345_v17 = vld [vmem:[%s3028_s2 + $0x28] sm:$0xff]  ;;  %v88_v19 = vld [vmem:[%s3027_s1 + $0x30] sm:$0xff] }
   0x6   :  { %1346 = vmatprep.subr.msk.bf16.mxu0 %vm1529_vm1, %v1344_v7  ;;  %1387 = vmatprep.subr.msk.bf16.mxu1 %vm1529_vm1, %v1344_v7  ;;  %v344_v18 = vld [vmem:[%s3028_s2 + $0x20] sm:$0xff]  ;;  %v89_v20 = vld [vmem:[%s3027_s1 + $0x38] sm:$0xff]  ;;  %v346_v22 = vld [vmem:[%s3028_s2 + $0x30] sm:$0xff] }
   0x7   :  { %369 = vperm.xlu1 %1407, %v342_v8   ;;  %359 = vperm.xlu0 %1406, %v340_v11   ;;  %v347_v21 = vld [vmem:[%s3028_s2 + $0x38] sm:$0xff]  ;;  %v1356_v23 = vpack.c.bf16 %v89_v20, %v88_v19  ;;  %v349_v24 = vld [vmem:[%s3028_s2 + $0x48] sm:$0xff]  ;;  %v348_v25 = vld [vmem:[%s3028_s2 + $0x40] sm:$0xff] }
   0x8   :  { %1314 = vmatprep.mubr.msk.f32.mxu0 %vm98_vm0, %v66_v15  ;;  %1326 = vmatprep.mubr.msk.f32.mxu1 %vm98_vm0, %v74_v16  ;;  %v90_v26 = vld [vmem:[%s3027_s1 + $0x40] sm:$0xff]  ;;  %v91_v27 = vld [vmem:[%s3027_s1 + $0x48] sm:$0xff]  ;;  %v351_v28 = vld [vmem:[%s3028_s2 + $0x58] sm:$0xff] }
   0x9   :  { %v350_v29 = vld [vmem:[%s3028_s2 + $0x50] sm:$0xff]  ;;  %v1362_v30 = vpack.c.bf16 %v91_v27, %v90_v26  ;;  %v353_v31 = vld [vmem:[%s3028_s2 + $0x68] sm:$0xff]  ;;  %v352_v32 = vld [vmem:[%s3028_s2 + $0x60] sm:$0xff] }
   0xa   :  { %v92_v33 = vld [vmem:[%s3027_s1 + $0x50] sm:$0xff]  ;;  %v93_v34 = vld [vmem:[%s3027_s1 + $0x58] sm:$0xff]  ;;  %v492_v38 = vld [vmem:[%s3030_s4 + $0x8] sm:$0xff] }
   0xb   :  { %374 = vperm.xlu1 %1407, %v343_v12   ;;  %364 = vperm.xlu0 %1406, %v341_v13   ;;  %v355_v35 = vld [vmem:[%s3028_s2 + $0x78] sm:$0xff]  ;;  %v354_v36 = vld [vmem:[%s3028_s2 + $0x70] sm:$0xff]  ;;  %v1368_v37 = vpack.c.bf16 %v93_v34, %v92_v33  ;;  %v491_v39 = vld [vmem:[%s3030_s4] sm:$0xff] }
   0xc   :  { %v94_v40 = vld [vmem:[%s3027_s1 + $0x60] sm:$0xff]  ;;  %v95_v41 = vld [vmem:[%s3027_s1 + $0x68] sm:$0xff]  ;;  %v494_v42 = vld [vmem:[%s3030_s4 + $0x18] sm:$0xff] }
   0xd   :  { %1349 = vmatpush3.bf16.xpose.msk.msra.mxu0 %vm1529_vm1, %v1344_v7  ;;  %1395 = vmatpush3.bf16.xpose.msk.msra.mxu1 %vm1529_vm1, %v1344_v7  ;;  %v493_v43 = vld [vmem:[%s3030_s4 + $0x10] sm:$0xff]  ;;  %v1374_v44 = vpack.c.bf16 %v95_v41, %v94_v40  ;;  %v496_v45 = vld [vmem:[%s3030_s4 + $0x28] sm:$0xff]  ;;  %v495_v46 = vld [vmem:[%s3030_s4 + $0x20] sm:$0xff] }
   0xe   :  { %1352 = vmatprep.subr.msk.bf16.mxu0 %vm1529_vm1, %v1350_v14  ;;  %1388 = vmatprep.subr.msk.bf16.mxu1 %vm1529_vm1, %v1350_v14  ;;  %v96_v47 = vld [vmem:[%s3027_s1 + $0x70] sm:$0xff]  ;;  %v97_v48 = vld [vmem:[%s3027_s1 + $0x78] sm:$0xff]  ;;  %v500_v52 = vld [vmem:[%s3030_s4 + $0x48] sm:$0xff] }
   0xf   :  { %384 = vperm.xlu1 %1407, %v345_v17   ;;  %379 = vperm.xlu0 %1406, %v344_v18   ;;  %v498_v49 = vld [vmem:[%s3030_s4 + $0x38] sm:$0xff]  ;;  %v497_v50 = vld [vmem:[%s3030_s4 + $0x30] sm:$0xff]  ;;  %v1380_v51 = vpack.c.bf16 %v97_v48, %v96_v47  ;;  %v499_v53 = vld [vmem:[%s3030_s4 + $0x40] sm:$0xff] }
  0x10   :  { %v502_v54 = vld [vmem:[%s3030_s4 + $0x58] sm:$0xff]  ;;  %v501_v55 = vld [vmem:[%s3030_s4 + $0x50] sm:$0xff]  ;;  %v504_v56 = vld [vmem:[%s3030_s4 + $0x68] sm:$0xff] }
  0x11   :  { %v503_v57 = vld [vmem:[%s3030_s4 + $0x60] sm:$0xff]  ;;  %v506_v58 = vld [vmem:[%s3030_s4 + $0x78] sm:$0xff]  ;;  %v67_v59 = vld [vmem:[%s3029_s0 + $0x8] sm:$0xff] }
  0x12   :  { %v75_v60 = vld [vmem:[%s3029_s0 + $0x48] sm:$0xff]  ;;  %v68_v61 = vld [vmem:[%s3029_s0 + $0x10] sm:$0xff]  ;;  %v69_v0 = vld [vmem:[%s3029_s0 + $0x18] sm:$0xff] }
  0x13   :  { %394 = vperm.xlu1 %1407, %v347_v21   ;;  %389 = vperm.xlu0 %1406, %v346_v22   ;;  %v76_v62 = vld [vmem:[%s3029_s0 + $0x50] sm:$0xff]  ;;  %v77_v1 = vld [vmem:[%s3029_s0 + $0x58] sm:$0xff]  ;;  %v70_v2 = vld [vmem:[%s3029_s0 + $0x20] sm:$0xff] }
  0x14   :  { %v505_v63 = vld [vmem:[%s3030_s4 + $0x70] sm:$0xff]  ;;  %v78_v4 = vld [vmem:[%s3029_s0 + $0x60] sm:$0xff]  ;;  %v71_v5 = vld [vmem:[%s3029_s0 + $0x28] sm:$0xff] }
  0x15   :  { %1355 = vmatpush3.bf16.xpose.msk.msra.mxu0 %vm1529_vm1, %v1350_v14  ;;  %1396 = vmatpush3.bf16.xpose.msk.msra.mxu1 %vm1529_vm1, %v1350_v14  ;;  %v79_v6 = vld [vmem:[%s3029_s0 + $0x68] sm:$0xff]  ;;  %v72_v7 = vld [vmem:[%s3029_s0 + $0x30] sm:$0xff]  ;;  %v73_v9 = vld [vmem:[%s3029_s0 + $0x38] sm:$0xff] }
  0x16   :  { %1358 = vmatprep.subr.msk.bf16.mxu0 %vm1529_vm1, %v1356_v23  ;;  %1389 = vmatprep.subr.msk.bf16.mxu1 %vm1529_vm1, %v1356_v23  ;;  %v80_v8 = vld [vmem:[%s3029_s0 + $0x70] sm:$0xff]  ;;  %v81_v10 = vld [vmem:[%s3029_s0 + $0x78] sm:$0xff]  ;;  %v1867_v41 = vld [vmem:[%s3032_s5] ss:$0 sm:$0xff] }
  0x17   :  { %404 = vperm.xlu1 %1407, %v349_v24   ;;  %399 = vperm.xlu0 %1406, %v348_v25  }
  0x1b   :  { %414 = vperm.xlu1 %1407, %v351_v28   ;;  %409 = vperm.xlu0 %1406, %v350_v29  }
  0x1d   :  { %1361 = vmatpush3.bf16.xpose.msk.msra.mxu0 %vm1529_vm1, %v1356_v23  ;;  %1397 = vmatpush3.bf16.xpose.msk.msra.mxu1 %vm1529_vm1, %v1356_v23  ;;  %v1473_v23 = vmov -inf  }
  0x1e   :  { %1364 = vmatprep.subr.msk.bf16.mxu0 %vm1529_vm1, %v1362_v30  ;;  %1390 = vmatprep.subr.msk.bf16.mxu1 %vm1529_vm1, %v1362_v30  ;;  %43 = vst.msk [vmem:[#allocation2 + $0x48] sm:$0xff] %vm3036_vm2, %v1473_v23  ;;  %34 = vst.msk [vmem:[#allocation2] sm:$0xff] %vm3036_vm2, %v1473_v23 }
  0x1f   :  { %424 = vperm.xlu1 %1407, %v353_v31   ;;  %419 = vperm.xlu0 %1406, %v352_v32   ;;  %35 = vst.msk [vmem:[#allocation2 + $0x8] sm:$0xff] %vm3036_vm2, %v1473_v23  ;;  %36 = vst.msk [vmem:[#allocation2 + $0x10] sm:$0xff] %vm3036_vm2, %v1473_v23 }
  0x20   :  { %37 = vst.msk [vmem:[#allocation2 + $0x18] sm:$0xff] %vm3036_vm2, %v1473_v23  ;;  %38 = vst.msk [vmem:[#allocation2 + $0x20] sm:$0xff] %vm3036_vm2, %v1473_v23 }
  0x21   :  { %39 = vst.msk [vmem:[#allocation2 + $0x28] sm:$0xff] %vm3036_vm2, %v1473_v23  ;;  %40 = vst.msk [vmem:[#allocation2 + $0x30] sm:$0xff] %vm3036_vm2, %v1473_v23 }
  0x22   :  { %41 = vst.msk [vmem:[#allocation2 + $0x38] sm:$0xff] %vm3036_vm2, %v1473_v23  ;;  %42 = vst.msk [vmem:[#allocation2 + $0x40] sm:$0xff] %vm3036_vm2, %v1473_v23 }
  0x23   :  { %434 = vperm.xlu1 %1407, %v355_v35   ;;  %429 = vperm.xlu0 %1406, %v354_v36   ;;  %44 = vst.msk [vmem:[#allocation2 + $0x50] sm:$0xff] %vm3036_vm2, %v1473_v23  ;;  %45 = vst.msk [vmem:[#allocation2 + $0x58] sm:$0xff] %vm3036_vm2, %v1473_v23  ;;  %v579_v36 = vlaneseq }
  0x24   :  { %46 = vst.msk [vmem:[#allocation2 + $0x60] sm:$0xff] %vm3036_vm2, %v1473_v23  ;;  %47 = vst.msk [vmem:[#allocation2 + $0x68] sm:$0xff] %vm3036_vm2, %v1473_v23 }
  0x25   :  { %1367 = vmatpush3.bf16.xpose.msk.msra.mxu0 %vm1529_vm1, %v1362_v30  ;;  %1398 = vmatpush3.bf16.xpose.msk.msra.mxu1 %vm1529_vm1, %v1362_v30  ;;  %48 = vst.msk [vmem:[#allocation2 + $0x70] sm:$0xff] %vm3036_vm2, %v1473_v23  ;;  %49 = vst.msk [vmem:[#allocation2 + $0x78] sm:$0xff] %vm3036_vm2, %v1473_v23 }
  0x26   :  { %1370 = vmatprep.subr.msk.bf16.mxu0 %vm1529_vm1, %v1368_v37  ;;  %1391 = vmatprep.subr.msk.bf16.mxu1 %vm1529_vm1, %v1368_v37 }
  0x27   :  { %512 = vperm.xlu1 %1407, %v492_v38   ;;  %509 = vperm.xlu0 %1406, %v491_v39   ;;  %v580_v38 = vshrl.u32 %v579_v36, 7 }
  0x2b   :  { %518 = vperm.xlu1 %1407, %v494_v42   ;;  %515 = vperm.xlu0 %1406, %v493_v43   ;;  %v581_v42 = vsub.s32 0, %v580_v38  ;;  %v3105_v38 = vmov 0 }
  0x2d   :  { %1373 = vmatpush3.bf16.xpose.msk.msra.mxu0 %vm1529_vm1, %v1368_v37  ;;  %1399 = vmatpush3.bf16.xpose.msk.msra.mxu1 %vm1529_vm1, %v1368_v37  ;;  %v576_v37 = vld [vmem:[%s3031_s7] sm:$0x1] }
  0x2e   :  { %1376 = vmatprep.subr.msk.bf16.mxu0 %vm1529_vm1, %v1374_v44  ;;  %1392 = vmatprep.subr.msk.bf16.mxu1 %vm1529_vm1, %v1374_v44  ;;  %vm577_vm3 = vcmp.gt.f32.partialorder %v576_v37, 0.5 }
  0x2f   :  { %524 = vperm.xlu1 %1407, %v496_v45   ;;  %521 = vperm.xlu0 %1406, %v495_v46   ;;  %v578_v43 = vsel %vm577_vm3, 1, %v1472_v3 }
  0x30   :  { %v1874_v46 = vrot.slane %v578_v43, %v581_v42 }
  0x32   :  { %vm3046_vm15 = vcmp.eq.s32.totalorder %v1874_v46, 1 }
  0x33   :  { %530 = vperm.xlu1 %1407, %v498_v49   ;;  %527 = vperm.xlu0 %1406, %v497_v50  }
  0x35   :  { %1379 = vmatpush3.bf16.xpose.msk.msra.mxu0 %vm1529_vm1, %v1374_v44  ;;  %1400 = vmatpush3.bf16.xpose.msk.msra.mxu1 %vm1529_vm1, %v1374_v44 }
  0x36   :  { %1382 = vmatprep.subr.msk.bf16.mxu0 %vm1529_vm1, %v1380_v51  ;;  %1393 = vmatprep.subr.msk.bf16.mxu1 %vm1529_vm1, %v1380_v51 }
  0x37   :  { %536 = vperm.xlu1 %1407, %v500_v52   ;;  %533 = vperm.xlu0 %1406, %v499_v53   ;;  %v1932_v53 = vld [vmem:[%s3033_s3] ss:$0 sm:$0xff] }
  0x3b   :  { %542 = vperm.xlu1 %1407, %v502_v54   ;;  %539 = vperm.xlu0 %1406, %v501_v55   ;;  %v3067_v54 = vmov 0 }
  0x3d   :  { %1385 = vmatpush3.bf16.xpose.msk.msra.mxu0 %vm1529_vm1, %v1380_v51  ;;  %1401 = vmatpush3.bf16.xpose.msk.msra.mxu1 %vm1529_vm1, %v1380_v51 }
  0x3f   :  { %548 = vperm.xlu1 %1407, %v504_v56   ;;  %545 = vperm.xlu0 %1406, %v503_v57   ;;  %v3131_v56 = vmov 0 }
  0x43   :  { %554 = vperm.xlu1 %1407, %v506_v58   ;;  %551 = vperm.xlu0 %1406, %v505_v63   ;;  %v3075_v58 = vmov 0 }
  0x44   :  { %1315 = vmatmul.mubr.msk.f32.vlgmr.msra.gmra.mrb[0].mxu0 %vm98_vm0, %v67_v59  ;;  %1327 = vmatmul.mubr.msk.f32.vlgmr.msra.gmra.mrb[0].mxu1 %vm98_vm0, %v75_v60 }
  0x45   :  { %1317 = vmatprep.mubr.msk.f32.mxu0 %vm98_vm0, %v68_v61  ;;  %1329 = vmatprep.mubr.msk.f32.mxu1 %vm98_vm0, %v76_v62  ;;  %v3156_v61 = vmov 0 }
  0x48   :  { %1318 = vmatmul.mubr.msk.f32.gmra.mrb[2].mxu0 %vm98_vm0, %v69_v0  ;;  %1330 = vmatmul.mubr.msk.f32.gmra.mrb[2].mxu1 %vm98_vm0, %v77_v1  ;;  %v3085_v0 = vmov 0 }
  0x49   :  { %1320 = vmatprep.mubr.msk.f32.mxu0 %vm98_vm0, %v70_v2  ;;  %1332 = vmatprep.mubr.msk.f32.mxu1 %vm98_vm0, %v78_v4  ;;  %v3089_v2 = vmov 0  ;;  %v3092_v4 = vmov 0 }
  0x4c   :  { %1321 = vmatmul.mubr.msk.f32.gmra.mrb[4].mxu0 %vm98_vm0, %v71_v5  ;;  %1333 = vmatmul.mubr.msk.f32.gmra.mrb[4].mxu1 %vm98_vm0, %v79_v6 }
  0x4d   :  { %1323 = vmatprep.mubr.msk.f32.mxu0 %vm98_vm0, %v72_v7  ;;  %1335 = vmatprep.mubr.msk.f32.mxu1 %vm98_vm0, %v80_v8 }
  0x50   :  { %1324 = vmatmul.mubr.msk.f32.gmra.mrb[6].mxu0 %vm98_vm0, %v73_v9  ;;  %1336 = vmatmul.mubr.msk.f32.gmra.mrb[6].mxu1 %vm98_vm0, %v81_v10 }
  0x86   :  { %v1801_v11 = vpop.permute.xlu1 %369  ;;  %v1803_v12 = vpop.permute.xlu0 %359 }
  0x87   :  { %v2004_v62 = vadd.f32 %v1932_v53, %v1801_v11  ;;  %v443_v63 = vadd.f32 %v1932_v53, %v1803_v12  ;;  %v3094_v11 = vmov 0 }
  0x8a   :  { %v1805_v13 = vpop.permute.xlu1 %374  ;;  %v1807_v14 = vpop.permute.xlu0 %364 }
  0x8b   :  { %v2042_v5 = vadd.f32 %v1932_v53, %v1805_v13  ;;  %v444_v7 = vadd.f32 %v1932_v53, %v1807_v14 }
  0x8e   :  { %v1809_v15 = vpop.permute.xlu1 %384  ;;  %v1811_v16 = vpop.permute.xlu0 %379 }
  0x8f   :  { %v2046_v6 = vadd.f32 %v1932_v53, %v1809_v15  ;;  %v2052_v8 = vadd.f32 %v1932_v53, %v1811_v16  ;;  %v3098_v15 = vmov 0  ;;  %v3101_v16 = vmov 0 }
  0x92   :  { %v1813_v17 = vpop.permute.xlu1 %394  ;;  %v1815_v18 = vpop.permute.xlu0 %389 }
  0x93   :  { %v2068_v12 = vadd.f32 %v1932_v53, %v1813_v17  ;;  %v2074_v14 = vadd.f32 %v1932_v53, %v1815_v18 }
  0x96   :  { %v1817_v19 = vpop.permute.xlu1 %404  ;;  %v1819_v20 = vpop.permute.xlu0 %399 }
  0x97   :  { %v452_v13 = vadd.f32 %v1932_v53, %v1817_v19  ;;  %v451_v23 = vadd.f32 %v1932_v53, %v1819_v20 }
  0x9a   :  { %v1821_v21 = vpop.permute.xlu1 %414  ;;  %v1823_v22 = vpop.permute.xlu0 %409 }
  0x9b   :  { %v454_v19 = vadd.f32 %v1932_v53, %v1821_v21  ;;  %v3109_v21 = vmov 0  ;;  %v453_v20 = vadd.f32 %v1932_v53, %v1823_v22 }
  0x9e   :  { %v1841_v24 = vpop.permute.xlu1 %424  ;;  %v1843_v25 = vpop.permute.xlu0 %419 }
  0x9f   :  { %v455_v48 = vadd.f32 %v1932_v53, %v1843_v25  ;;  %v3134_v25 = vmov 0 }
  0xa2   :  { %v1845_v26 = vpop.permute.xlu1 %434  ;;  %v1847_v27 = vpop.permute.xlu0 %429 }
  0xa6   :  { %v513_v28 = vpop.permute.xlu1 %512  ;;  %v510_v29 = vpop.permute.xlu0 %509 }
  0xa7   :  { %vm561_vm4 = vcmp.eq.s32.totalorder %v513_v28, %v1867_v41  ;;  %vm3039_vm5 = vcmp.eq.s32.totalorder %v510_v29, %v1867_v41 }
  0xa8   :  { %vm1881_vm8 = vmxor %vm561_vm4, %vm3044_vm7 }
  0xa9   :  { %vm1890_vm10 = vmxor %vm3039_vm5, %vm3044_vm7 }
  0xaa   :  { %v1849_v30 = vpop.permute.xlu1 %518  ;;  %v1851_v31 = vpop.permute.xlu0 %515 }
  0xab   :  { %vm3038_vm6 = vcmp.eq.s32.totalorder %v1849_v30, %v1867_v41  ;;  %vm3037_vm9 = vcmp.eq.s32.totalorder %v1851_v31, %v1867_v41 }
  0xac   :  { %vm1899_vm12 = vmxor %vm3038_vm6, %vm3044_vm7 }
  0xad   :  { %vm1911_vm0 = vmxor %vm3037_vm9, %vm3044_vm7 }
  0xae   :  { %v1853_v32 = vpop.permute.xlu1 %524  ;;  %v1855_v33 = vpop.permute.xlu0 %521 }
  0xaf   :  { %vm3040_vm13 = vcmp.eq.s32.totalorder %v1855_v33, %v1867_v41 }
  0xb0   :  { %vm1940_vm6 = vmxor %vm3040_vm13, %vm3044_vm7 }
  0xb1   :  { %v3068_v54 = vsel %vm1940_vm6, 4294967295, %v3067_v54 }
  0xb2   :  { %v1857_v34 = vpop.permute.xlu1 %530  ;;  %v1859_v35 = vpop.permute.xlu0 %527 }
  0xb6   :  { %v537_v39 = vpop.permute.xlu1 %536  ;;  %v534_v40 = vpop.permute.xlu0 %533 }
  0xb7   :  { %vm569_vm11 = vcmp.eq.s32.totalorder %v537_v39, %v1867_v41  ;;  %vm3041_vm14 = vcmp.eq.s32.totalorder %v534_v40, %v1867_v41 }
  0xb8   :  { %vm1924_vm3 = vmxor %vm569_vm11, %vm3044_vm7 }
  0xb9   :  { %vm1947_vm5 = vmxor %vm3041_vm14, %vm3044_vm7 }
  0xba   :  { %v1871_v44 = vpop.permute.xlu1 %542  ;;  %v540_v45 = vpop.permute.xlu0 %539  ;;  %vm1963_vm13 = vmand %vm569_vm11, %vm3046_vm15 }
  0xbb   :  { %vm3042_vm1 = vcmp.eq.s32.totalorder %v1871_v44, %v1867_v41  ;;  %vm3043_vm2 = vcmp.eq.s32.totalorder %v540_v45, %v1867_v41  ;;  %vm1971_vm14 = vmand %vm561_vm4, %vm3046_vm15 }
  0xbc   :  { %vm1955_vm9 = vmxor %vm3042_vm1, %vm3044_vm7  ;;  %v3076_v58 = vsel %vm1971_vm14, 4294967295, %v3075_v58  ;;  %vm3081_vm1 = vcmp.eq.s32.totalorder %v534_v40, %v1867_v41 }
  0xbd   :  { %vm1980_vm6 = vmxor %vm3043_vm2, %vm3044_vm7 }
  0xbe   :  { %v1917_v50 = vpop.permute.xlu1 %548  ;;  %v1919_v51 = vpop.permute.xlu0 %545  ;;  %vm1990_vm4 = vmand %vm1881_vm8, %vm3046_vm15  ;;  %vm3084_vm8 = vcmp.eq.s32.totalorder %v1853_v32, %v1867_v41 }
  0xbf   :  { %vm1998_vm14 = vmand %vm3081_vm1, %vm3046_vm15 }
  0xc0   :  { %vm2012_vm2 = vmxor %vm3084_vm8, %vm3044_vm7  ;;  %vm3091_vm8 = vcmp.eq.s32.totalorder %v510_v29, %v1867_v41 }
  0xc1   :  { %v3086_v0 = vsel %vm2012_vm2, 4294967295, %v3085_v0  ;;  %vm2020_vm1 = vmand %vm1924_vm3, %vm3046_vm15  ;;  %vm3096_vm3 = vmmov 1  }
  0xc2   :  { %vm2028_vm11 = vmand %vm1890_vm10, %vm3046_vm15  ;;  %v2054_v9 = vpop.permute.xlu1 %554  ;;  %v2056_v10 = vpop.permute.xlu0 %551 }
  0xc3   :  { %v3090_v2 = vsel %vm2028_vm11, 4294967295, %v3089_v2  ;;  %vm2036_vm7 = vmand %vm3091_vm8, %vm3046_vm15  ;;  %vm3097_vm8 = vcmp.eq.s32.totalorder %v1917_v50, %v1867_v41 }
  0xc4   :  { %v3093_v4 = vsel %vm2036_vm7, 4294967295, %v3092_v4  ;;  %vm2062_vm10 = vmand %vm1947_vm5, %vm3046_vm15  ;;  %vm3100_vm15 = vcmp.eq.s32.totalorder %v1919_v51, %v1867_v41  ;;  %vm3104_vm5 = vcmp.eq.s32.totalorder %v540_v45, %v1867_v41  ;;  %v3124_v45 = vmov 0 }
  0xc5   :  { %v3095_v11 = vsel %vm2062_vm10, 4294967295, %v3094_v11  ;;  %vm2080_vm2 = vmxor %vm3097_vm8, %vm3096_vm3  ;;  %vm3103_vm8 = vcmp.eq.s32.totalorder %v1874_v46, 1 }
  0xc6   :  { %v3099_v15 = vsel %vm2080_vm2, 4294967295, %v3098_v15  ;;  %vm2090_vm7 = vmxor %vm3100_vm15, %vm3096_vm3 }
  0xc7   :  { %v3102_v16 = vsel %vm2090_vm7, 4294967295, %v3101_v16  ;;  %vm2102_vm15 = vmand %vm3104_vm5, %vm3103_vm8  ;;  %vm3108_vm7 = vcmp.eq.s32.totalorder %v1849_v30, %v1867_v41 }
  0xc8   :  { %v3106_v38 = vsel %vm2102_vm15, 4294967295, %v3105_v38  ;;  %vm3107_vm2 = vmmov %vm3103_vm8  ;;  %vm3112_vm8 = vcmp.eq.s32.totalorder %v1871_v44, %v1867_v41  ;;  %v2154_v44 = vadd.f32 %v1932_v53, %v1841_v24  ;;  %v3127_v24 = vmov 0 }
  0xc9   :  { %vm2111_vm10 = vmand %vm3108_vm7, %vm3107_vm2 }
  0xca   :  { %v3110_v21 = vsel %vm2111_vm10, 4294967295, %v3109_v21  ;;  %vm3111_vm5 = vmmov %vm3107_vm2 }
  0xcb   :  { %vm2124_vm15 = vmand %vm3112_vm8, %vm3111_vm5 }
  0xcc   :  { %vm2132_vm7 = vmand %vm1911_vm0, %vm3107_vm2  ;;  %vm3133_vm0 = vcmp.eq.s32.totalorder %v2056_v10, %v1867_v41 }
  0xcd   :  { %vm3117_vm11 = vmmov %vm3107_vm2 }
  0xce   :  { %vm2140_vm10 = vmand %vm1899_vm12, %vm3117_vm11  ;;  %vm3123_vm12 = vcmp.eq.s32.totalorder %v1859_v35, %v1867_v41 }
  0xcf   :  { %vm3120_vm5 = vmmov %vm3107_vm2 }
  0xd0   :  { %vm2148_vm8 = vmand %vm1980_vm6, %vm3120_vm5 }
  0xd1   :  { %vm2162_vm11 = vmxor %vm3123_vm12, %vm3096_vm3 }
  0xd2   :  { %v3125_v45 = vsel %vm2162_vm11, 4294967295, %v3124_v45  ;;  %vm3126_vm6 = vmmov %vm3107_vm2  ;;  %vm3138_vm11 = vcmp.eq.s32.totalorder %v1855_v33, %v1867_v41 }
  0xd3   :  { %vm2172_vm2 = vmand %vm1955_vm9, %vm3126_vm6  ;;  %vm3130_vm9 = vcmp.eq.s32.totalorder %v1851_v31, %v1867_v41 }
  0xd4   :  { %v3128_v24 = vsel %vm2172_vm2, 4294967295, %v3127_v24  ;;  %vm3129_vm12 = vmmov %vm3120_vm5 }
  0xd5   :  { %vm2189_vm6 = vmand %vm3130_vm9, %vm3129_vm12  ;;  %vm3136_vm12 = vnez %v3076_v58  ;;  %vm3137_vm9 = vcmp.eq.s32.totalorder %v1874_v46, 1  ;;  %v3146_v58 = vmov 0 }
  0xd6   :  { %v3132_v56 = vsel %vm2189_vm6, 4294967295, %v3131_v56  ;;  %vm2197_vm5 = vmxor %vm3133_vm0, %vm3096_vm3  ;;  %vm3142_vm6 = vcmp.eq.s32.totalorder %v1919_v51, %v1867_v41 }
  0xd7   :  { %v3135_v25 = vsel %vm2197_vm5, 4294967295, %v3134_v25  ;;  %vm2211_vm0 = vmand %vm3138_vm11, %vm3137_vm9 }
  0xd8   :  { %vm3141_vm5 = vmmov %vm3137_vm9 }
  0xd9   :  { %vm2220_vm2 = vmand %vm3142_vm6, %vm3141_vm5 }
  0xda   :  { %vm3148_vm11 = vmmov %vm3141_vm5  ;;  %vm3149_vm5 = vcmp.eq.s32.totalorder %v1853_v32, %v1867_v41 }
  0xdb   :  { %vm2242_vm6 = vmand %vm3149_vm5, %vm3148_vm11  ;;  %vm3158_vm11 = vnez %v3090_v2  ;;  %vm3159_vm5 = vnez %v3095_v11 }
 0x117   :  { %v1316_v17 = vpop.f32.mrb[0].mxu0  ;;  %v1328_v18 = vpop.f32.mrb[0].mxu1 }
 0x118   :  { %v460_v28 = vmul.f32 2.0, %v1316_v17  ;;  %v468_v29 = vmul.f32 2.0, %v1328_v18  ;;  %v261_v36 = vpop.f32.mrb[1].mxu0  ;;  %v301_v37 = vpop.f32.mrb[1].mxu1 }
 0x119   :  { %v459_v39 = vmul.f32 2.0, %v261_v36  ;;  %v467_v40 = vmul.f32 2.0, %v301_v37 }
 0x11a   :  { %v2166_v47 = vsub.f32 %v452_v13, %v468_v29  ;;  %v476_v3 = vsub.f32 %v444_v7, %v460_v28 }
 0x11b   :  { %v1319_v49 = vpop.f32.mrb[2].mxu0  ;;  %v1331_v52 = vpop.f32.mrb[2].mxu1  ;;  %v2180_v55 = vsub.f32 %v451_v23, %v467_v40  ;;  %v2182_v59 = vsub.f32 %v443_v63, %v459_v39 }
 0x11c   :  { %v462_v7 = vmul.f32 2.0, %v1319_v49  ;;  %v470_v63 = vmul.f32 2.0, %v1331_v52  ;;  %v271_v13 = vpop.f32.mrb[3].mxu0  ;;  %v311_v17 = vpop.f32.mrb[3].mxu1  ;;  %v657_v31 = vsel %vm1963_vm13, %v2166_v47, -inf  ;;  %v649_v18 = vsel %vm3136_vm12, %v476_v3, -inf }
 0x11d   :  { %vm3145_vm13 = vcmp.eq.s32.totalorder %v1857_v34, %v1867_v41  ;;  %v461_v33 = vmul.f32 2.0, %v271_v13  ;;  %v469_v28 = vmul.f32 2.0, %v311_v17  ;;  %682 = vmax.xlane.f32.xlu0 %v657_v31  ;;  %666 = vmax.xlane.f32.xlu1 %v649_v18  ;;  %v746_v29 = vsel %vm1990_vm4, %v476_v3, inf }
 0x11e   :  { %vm2228_vm12 = vmxor %vm3145_vm13, %vm3096_vm3  ;;  %v656_v51 = vsel %vm1998_vm14, %v2180_v55, -inf  ;;  %vm3152_vm13 = vnez %v3068_v54  ;;  %vm3155_vm14 = vcmp.eq.s32.totalorder %v2054_v9, %v1867_v41  ;;  %v754_v32 = vsel %vm2020_vm1, %v2166_v47, inf }
 0x11f   :  { %v3147_v58 = vsel %vm2228_vm12, 4294967295, %v3146_v58  ;;  %vm2250_vm12 = vmand %vm3152_vm13, %vm3137_vm9  ;;  %v745_v54 = vsel %vm3158_vm11, %v2182_v59, inf  ;;  %v753_v37 = vsel %vm3159_vm5, %v2180_v55, inf  ;;  %vm3160_vm9 = vnez %v3093_v4  ;;  %v1322_v40 = vpop.f32.mrb[4].mxu0  ;;  %v1334_v2 = vpop.f32.mrb[4].mxu1 }
 0x120   :  { %vm2258_vm4 = vmxor %vm3155_vm14, %vm3096_vm3  ;;  %v648_v39 = vsel %vm3160_vm9, %v2182_v59, -inf  ;;  %vm3161_vm3 = vcmp.eq.s32.totalorder %v1874_v46, 1  ;;  %vm3162_vm13 = vcmp.eq.s32.totalorder %v1917_v50, %v1867_v41  ;;  %v2283_v47 = vsub.f32 %v453_v20, %v469_v28  ;;  %v281_v52 = vpop.f32.mrb[5].mxu0  ;;  %v321_v55 = vpop.f32.mrb[5].mxu1  ;;  %v641_v46 = vld [vmem:[#allocation2 + $0x48] sm:$0xff] }
 0x121   :  { %v3157_v61 = vsel %vm2258_vm4, 4294967295, %v3156_v61  ;;  %vm2279_vm14 = vmand %vm3162_vm13, %vm3161_vm3  ;;  %v2286_v11 = vsub.f32 %v2042_v5, %v462_v7  ;;  %v2288_v3 = vsub.f32 %v454_v19, %v470_v63  ;;  %v2291_v4 = vsub.f32 %v2004_v62, %v461_v33  ;;  %763 = vmin.xlane.f32.xlu0 %v746_v29  ;;  %680 = vmax.xlane.f32.xlu1 %v656_v51 }
 0x122   :  { %vm3165_vm1 = vmmov %vm3161_vm3  ;;  %vm3166_vm11 = vnez %v3102_v16  ;;  %v458_v20 = vadd.f32 %v1932_v53, %v1845_v26  ;;  %v457_v5 = vadd.f32 %v1932_v53, %v1847_v27  ;;  %v464_v49 = vmul.f32 2.0, %v1322_v40 }
 0x123   :  { %vm2297_vm5 = vmand %vm3166_vm11, %vm3165_vm1  ;;  %v472_v19 = vmul.f32 2.0, %v1334_v2  ;;  %vm3170_vm3 = vnez %v3086_v0  ;;  %v463_v16 = vmul.f32 2.0, %v281_v52  ;;  %v471_v59 = vmul.f32 2.0, %v321_v55  ;;  %v1325_v17 = vpop.f32.mrb[6].mxu0  ;;  %v1337_v31 = vpop.f32.mrb[6].mxu1 }
 0x124   :  { %vm3169_vm9 = vmmov %vm3165_vm1  ;;  %vm3173_vm1 = vnez %v3106_v38  ;;  %vm3174_vm11 = vnez %v3110_v21  ;;  %v659_v0 = vsel %vm2124_vm15, %v2288_v3, -inf  ;;  %v747_v7 = vsel %vm2132_vm7, %v2291_v4, inf  ;;  %v291_v2 = vpop.f32.mrb[7].mxu0  ;;  %v633_v38 = vld [vmem:[#allocation2 + $0x8] sm:$0xff] }
 0x125   :  { %vm2309_vm13 = vmand %vm3170_vm3, %vm3169_vm9  ;;  %v658_v26 = vsel %vm3173_vm1, %v2283_v47, -inf  ;;  %v651_v27 = vsel %vm3174_vm11, %v2286_v11, -inf  ;;  %v748_v63 = vsel %vm2140_vm10, %v2286_v11, inf  ;;  %vm3182_vm7 = vnez %v3128_v24  ;;  %779 = vmin.xlane.f32.xlu0 %v754_v32  ;;  %761 = vmin.xlane.f32.xlu1 %v745_v54  ;;  %v640_v24 = vld [vmem:[#allocation2 + $0x40] sm:$0xff] }
 0x126   :  { %vm3175_vm4 = vmmov %vm3169_vm9  ;;  %vm3176_vm9 = vcmp.eq.s32.totalorder %v1859_v35, %v1867_v41  ;;  %v755_v35 = vsel %vm2148_vm8, %v2283_v47, inf  ;;  %v756_v18 = vsel %vm3182_vm7, %v2288_v3, inf  ;;  %v2352_v33 = vsub.f32 %v2052_v8, %v463_v16  ;;  %v331_v8 = vpop.f32.mrb[7].mxu1 }
 0x127   :  { %vm2324_vm3 = vmand %vm3176_vm9, %vm3175_vm4  ;;  %vm3179_vm9 = vnez %v3099_v15  ;;  %vm3183_vm8 = vnez %v3132_v56  ;;  %v2357_v29 = vsub.f32 %v455_v48, %v471_v59  ;;  %v466_v51 = vmul.f32 2.0, %v1325_v17 }
 0x128   :  { %vm2344_vm11 = vmand %vm3179_vm9, %vm3175_vm4  ;;  %v650_v28 = vsel %vm3183_vm8, %v2291_v4, -inf  ;;  %vm3184_vm9 = vcmp.eq.s32.totalorder %v2056_v10, %v1867_v41  ;;  %v474_v40 = vmul.f32 2.0, %v1337_v31  ;;  %v2369_v52 = vsub.f32 %v2046_v6, %v464_v49 }
 0x129   :  { %vm2364_vm10 = vmand %vm3184_vm9, %vm3175_vm4  ;;  %v2372_v55 = vsub.f32 %v2154_v44, %v472_v19  ;;  %vm3188_vm7 = vcmp.eq.s32.totalorder %v1857_v34, %v1867_v41  ;;  %v465_v48 = vmul.f32 2.0, %v291_v2  ;;  %v473_v16 = vmul.f32 2.0, %v331_v8  ;;  %777 = vmin.xlane.f32.xlu1 %v753_v37  ;;  %664 = vmax.xlane.f32.xlu0 %v648_v39  ;;  %v642_v8 = vld [vmem:[#allocation2 + $0x50] sm:$0xff] }
 0x12a   :  { %vm3187_vm8 = vmmov %vm3175_vm4  ;;  %v652_v6 = vsel %vm2211_vm0, %v2352_v33, -inf  ;;  %v660_v44 = vsel %vm2220_vm2, %v2357_v29, -inf  ;;  %vm3191_vm9 = vnez %v3125_v45  ;;  %v653_v32 = vsel %vm2242_vm6, %v2369_v52, -inf }
 0x12b   :  { %vm2379_vm15 = vmand %vm3188_vm7, %vm3187_vm8  ;;  %v749_v23 = vsel %vm2250_vm12, %v2352_v33, inf  ;;  %v661_v57 = vsel %vm2279_vm14, %v2372_v55, -inf  ;;  %v757_v45 = vsel %vm2297_vm5, %v2357_v29, inf  ;;  %vm3195_vm2 = vcmp.eq.s32.totalorder %v2054_v9, %v1867_v41 }
 0x12c   :  { %vm2393_vm7 = vmand %vm3191_vm9, %vm3175_vm4  ;;  %v481_v60 = vsub.f32 %v2074_v14, %v465_v48  ;;  %v489_v54 = vsub.f32 %v457_v5, %v473_v16  ;;  %v750_v1 = vsel %vm2309_vm13, %v2369_v52, inf  ;;  %v758_v50 = vsel %vm2344_vm11, %v2372_v55, inf  ;;  %v635_v55 = vld [vmem:[#allocation2 + $0x18] sm:$0xff] }
 0x12d   :  { %vm3194_vm8 = vmmov %vm3175_vm4  ;;  %vm3199_vm6 = vnez %v3135_v25  ;;  %v482_v9 = vsub.f32 %v2068_v12, %v466_v51  ;;  %v490_v14 = vsub.f32 %v458_v20, %v474_v40  ;;  %vm3207_vm9 = vnez %v3157_v61  ;;  %684 = vmax.xlane.f32.xlu1 %v658_v26  ;;  %670 = vmax.xlane.f32.xlu0 %v651_v27 }
 0x12e   :  { %vm2414_vm0 = vmand %vm3195_vm2, %vm3194_vm8  ;;  %v654_v25 = vsel %vm2324_vm3, %v481_v60, -inf  ;;  %v662_v49 = vsel %vm2364_vm10, %v489_v54, -inf  ;;  %v751_v12 = vsel %vm2393_vm7, %v481_v60, inf  ;;  %v1475_v59 = vmov inf  }
 0x12f   :  { %vm3198_vm12 = vmmov %vm3175_vm4  ;;  %v655_v37 = vsel %vm2379_vm15, %v482_v9, -inf  ;;  %v663_v39 = vsel %vm2414_vm0, %v490_v14, -inf  ;;  %vm3210_vm10 = vcmask 7168  }
 0x130   :  { %vm2429_vm14 = vmand %vm3199_vm6, %vm3198_vm12  ;;  %51 = vst.msk [vmem:[#allocation3 + $0x8] sm:$0xff] %vm3210_vm10, %v1475_v59 }
 0x131   :  { %vm3202_vm5 = vmmov %vm3175_vm4  ;;  %vm3203_vm4 = vnez %v3147_v58  ;;  %v759_v20 = vsel %vm2429_vm14, %v489_v54, inf  ;;  %686 = vmax.xlane.f32.xlu0 %v659_v0  ;;  %765 = vmin.xlane.f32.xlu1 %v747_v7 }
 0x132   :  { %vm2438_vm13 = vmand %vm3203_vm4, %vm3202_vm5 }
 0x133   :  { %vm3206_vm11 = vmmov %vm3202_vm5  ;;  %v752_v19 = vsel %vm2438_vm13, %v482_v9, inf }
 0x134   :  { %vm2454_vm8 = vmand %vm3207_vm9, %vm3206_vm11 }
 0x135   :  { %v760_v62 = vsel %vm2454_vm8, %v490_v14, inf  ;;  %vm3211_vm3 = vmmov %vm3210_vm10  ;;  %767 = vmin.xlane.f32.xlu0 %v748_v63  ;;  %781 = vmin.xlane.f32.xlu1 %v755_v35 }
 0x136   :  { %50 = vst.msk [vmem:[#allocation3] sm:$0xff] %vm3211_vm3, %v1475_v59  ;;  %vm3212_vm7 = vmmov %vm3211_vm3 }
 0x137   :  { %52 = vst.msk [vmem:[#allocation3 + $0x10] sm:$0xff] %vm3212_vm7, %v1475_v59  ;;  %vm3213_vm2 = vmmov %vm3211_vm3  ;;  %v730_v43 = vld [vmem:[#allocation3 + $0x8] sm:$0xff] }
 0x138   :  { %53 = vst.msk [vmem:[#allocation3 + $0x18] sm:$0xff] %vm3213_vm2, %v1475_v59  ;;  %vm3214_vm12 = vmmov %vm3213_vm2 }
 0x139   :  { %54 = vst.msk [vmem:[#allocation3 + $0x20] sm:$0xff] %vm3214_vm12, %v1475_v59  ;;  %vm3215_vm15 = vmmov %vm3213_vm2  ;;  %783 = vmin.xlane.f32.xlu0 %v756_v18  ;;  %672 = vmax.xlane.f32.xlu1 %v652_v6  ;;  %v632_v18 = vld [vmem:[#allocation2] sm:$0xff] }
 0x13a   :  { %55 = vst.msk [vmem:[#allocation3 + $0x28] sm:$0xff] %vm3215_vm15, %v1475_v59  ;;  %vm3216_vm0 = vmmov %vm3213_vm2 }
 0x13b   :  { %56 = vst.msk [vmem:[#allocation3 + $0x30] sm:$0xff] %vm3216_vm0, %v1475_v59  ;;  %vm3217_vm6 = vmmov %vm3216_vm0 }
 0x13c   :  { %57 = vst.msk [vmem:[#allocation3 + $0x38] sm:$0xff] %vm3217_vm6, %v1475_v59  ;;  %vm3218_vm14 = vmmov %vm3216_vm0 }
 0x13d   :  { %58 = vst.msk [vmem:[#allocation3 + $0x40] sm:$0xff] %vm3218_vm14, %v1475_v59  ;;  %vm3219_vm5 = vmmov %vm3216_vm0  ;;  %668 = vmax.xlane.f32.xlu0 %v650_v28  ;;  %688 = vmax.xlane.f32.xlu1 %v660_v44  ;;  %v729_v4 = vld [vmem:[#allocation3] sm:$0xff] }
 0x13e   :  { %59 = vst.msk [vmem:[#allocation3 + $0x48] sm:$0xff] %vm3219_vm5, %v1475_v59  ;;  %vm3220_vm4 = vmmov %vm3216_vm0 }
 0x13f   :  { %60 = vst.msk [vmem:[#allocation3 + $0x50] sm:$0xff] %vm3220_vm4, %v1475_v59  ;;  %vm3221_vm13 = vmmov %vm3216_vm0  ;;  %v732_v60 = vld [vmem:[#allocation3 + $0x18] sm:$0xff] }
 0x140   :  { %61 = vst.msk [vmem:[#allocation3 + $0x58] sm:$0xff] %vm3221_vm13, %v1475_v59  ;;  %vm3222_vm11 = vmmov %vm3216_vm0 }
 0x141   :  { %62 = vst.msk [vmem:[#allocation3 + $0x60] sm:$0xff] %vm3222_vm11, %v1475_v59  ;;  %vm3223_vm9 = vmmov %vm3216_vm0  ;;  %674 = vmax.xlane.f32.xlu0 %v653_v32  ;;  %769 = vmin.xlane.f32.xlu1 %v749_v23  ;;  %v643_v23 = vld [vmem:[#allocation2 + $0x58] sm:$0xff] }
 0x142   :  { %63 = vst.msk [vmem:[#allocation3 + $0x68] sm:$0xff] %vm3223_vm9, %v1475_v59  ;;  %vm3224_vm8 = vmmov %vm3216_vm0 }
 0x143   :  { %64 = vst.msk [vmem:[#allocation3 + $0x70] sm:$0xff] %vm3224_vm8, %v1475_v59  ;;  %vm3225_vm10 = vmmov %vm3216_vm0 }
 0x144   :  { %65 = vst.msk [vmem:[#allocation3 + $0x78] sm:$0xff] %vm3225_vm10, %v1475_v59  ;;  %vm3233_vm6 = vmmov %vm3220_vm4  ;;  %v737_v17 = vld [vmem:[#allocation3 + $0x40] sm:$0xff] }
 0x145   :  { %690 = vmax.xlane.f32.xlu0 %v661_v57  ;;  %785 = vmin.xlane.f32.xlu1 %v757_v45  ;;  %vm3234_vm14 = vmmov %vm3220_vm4  ;;  %v738_v3 = vld [vmem:[#allocation3 + $0x48] sm:$0xff]  ;;  %v731_v45 = vld [vmem:[#allocation3 + $0x10] sm:$0xff] }
 0x146   :  { %vm3235_vm5 = vmmov %vm3220_vm4 }
 0x147   :  { %vm3236_vm13 = vmmov %vm3220_vm4 }
 0x148   :  { %vm3237_vm11 = vmmov %vm3220_vm4 }
 0x149   :  { %771 = vmin.xlane.f32.xlu0 %v750_v1  ;;  %676 = vmax.xlane.f32.xlu1 %v654_v25  ;;  %vm3238_vm9 = vmmov %vm3220_vm4 }
 0x14a   :  { %vm3239_vm8 = vmmov %vm3220_vm4 }
 0x14b   :  { %vm3240_vm10 = vmmov %vm3220_vm4 }
 0x14c   :  { %vm3241_vm3 = vmmov %vm3220_vm4 }
 0x14d   :  { %787 = vmin.xlane.f32.xlu0 %v758_v50  ;;  %692 = vmax.xlane.f32.xlu1 %v662_v49  ;;  %v739_v50 = vld [vmem:[#allocation3 + $0x50] sm:$0xff]  ;;  %vm3242_vm2 = vmmov %vm3241_vm3 }
 0x14e   :  { %vm3243_vm12 = vmmov %vm3242_vm2 }
 0x151   :  { %678 = vmax.xlane.f32.xlu0 %v655_v37  ;;  %773 = vmin.xlane.f32.xlu1 %v751_v12 }
 0x155   :  { %694 = vmax.xlane.f32.xlu0 %v663_v39  ;;  %789 = vmin.xlane.f32.xlu1 %v759_v20 }
 0x159   :  { %775 = vmin.xlane.f32.xlu0 %v752_v19 }
 0x15d   :  { %791 = vmin.xlane.f32.xlu0 %v760_v62 }
 0x1aa   :  { %v683_v21 = vpop.xlane.xlu0 %682  ;;  %v667_v42 = vpop.xlane.xlu1 %666 }
 0x1ab   :  { %v705_v22 = vmax.f32 %v641_v46, %v683_v21  ;;  %v697_v30 = vmax.f32 %v633_v38, %v667_v42  ;;  %v740_v46 = vld [vmem:[#allocation3 + $0x58] sm:$0xff] }
 0x1ad   :  { %722 = vst.msk [vmem:[#allocation2 + $0x48] sm:$0xff] %vm3233_vm6, %v705_v22 }
 0x1ae   :  { %714 = vst.msk [vmem:[#allocation2 + $0x8] sm:$0xff] %vm3234_vm14, %v697_v30  ;;  %v764_v56 = vpop.xlane.xlu0 %763  ;;  %v681_v61 = vpop.xlane.xlu1 %680  ;;  %vm3244_vm14 = vmmov %vm3242_vm2 }
 0x1af   :  { %v794_v47 = vmin.f32 %v730_v43, %v764_v56  ;;  %v704_v11 = vmax.f32 %v640_v24, %v681_v61  ;;  %v636_v24 = vld [vmem:[#allocation2 + $0x20] sm:$0xff] }
 0x1b1   :  { %810 = vst.msk [vmem:[#allocation3 + $0x8] sm:$0xff] %vm3235_vm5, %v794_v47 }
 0x1b2   :  { %721 = vst.msk [vmem:[#allocation2 + $0x40] sm:$0xff] %vm3220_vm4, %v704_v11  ;;  %v780_v26 = vpop.xlane.xlu0 %779  ;;  %v762_v27 = vpop.xlane.xlu1 %761  ;;  %vm3245_vm4 = vmmov %vm3242_vm2 }
 0x1b3   :  { %v802_v53 = vmin.f32 %v738_v3, %v780_v26  ;;  %v793_v0 = vmin.f32 %v729_v4, %v762_v27 }
 0x1b4   :  { %v837_v7 = vld [vmem:[#allocation2 + $0x48] sm:$0xff] }
 0x1b5   :  { %v829_v63 = vld [vmem:[#allocation2 + $0x8] sm:$0xff]  ;;  %v2518_v35 = vmax.f32 %v837_v7, 1e-12  ;;  %818 = vst.msk [vmem:[#allocation3 + $0x48] sm:$0xff] %vm3236_vm13, %v802_v53 }
 0x1b6   :  { %v2520_v13 = vmax.f32 %v829_v63, 1e-12  ;;  %809 = vst.msk [vmem:[#allocation3] sm:$0xff] %vm3237_vm11, %v793_v0  ;;  %v778_v31 = vpop.xlane.xlu1 %777  ;;  %v665_v33 = vpop.xlane.xlu0 %664 }
 0x1b7   :  { %v801_v51 = vmin.f32 %v737_v17, %v778_v31  ;;  %v696_v40 = vmax.f32 %v632_v18, %v665_v33  ;;  %vm925_vm7 = vcmp.eq.f32.partialorder %v2518_v35, inf  ;;  %vm927_vm1 = vcmp.eq.f32.partialorder %v2518_v35, 0.0 }
 0x1b8   :  { %1408 = vrsqrt.f32 %v2520_v13  ;;  %v973_v28 = vld [vmem:[#allocation3 + $0x8] sm:$0xff]  ;;  %v928_v39 = vand.u32 2147483648, %v2518_v35  ;;  %vm869_vm15 = vcmp.eq.f32.partialorder %v2520_v13, inf  ;;  %vm871_vm0 = vcmp.eq.f32.partialorder %v2520_v13, 0.0 }
 0x1b9   :  { %v836_v29 = vld [vmem:[#allocation2 + $0x40] sm:$0xff]  ;;  %1410 = vrsqrt.f32 %v2518_v35  ;;  %v2526_v15 = vmax.f32 %v973_v28, 1e-12  ;;  %817 = vst.msk [vmem:[#allocation3 + $0x40] sm:$0xff] %vm3238_vm9, %v801_v51  ;;  %v872_v59 = vand.u32 2147483648, %v2520_v13 }
 0x1ba   :  { %v2528_v2 = vmax.f32 %v836_v29, 1e-12  ;;  %v685_v52 = vpop.xlane.xlu1 %684  ;;  %v671_v10 = vpop.xlane.xlu0 %670  ;;  %713 = vst.msk [vmem:[#allocation2] sm:$0xff] %vm3239_vm8, %v696_v40 }
 0x1bb   :  { %1412 = vrsqrt.f32 %v2526_v15  ;;  %v706_v34 = vmax.f32 %v642_v8, %v685_v52  ;;  %v699_v32 = vmax.f32 %v635_v55, %v671_v10  ;;  %vm1013_vm6 = vcmp.eq.f32.partialorder %v2526_v15, inf }
 0x1bc   :  { %v981_v48 = vld [vmem:[#allocation3 + $0x48] sm:$0xff]  ;;  %1414 = vrsqrt.f32 %v2528_v2  ;;  %vm1015_vm5 = vcmp.eq.f32.partialorder %v2526_v15, 0.0  ;;  %v1016_v61 = vand.u32 2147483648, %v2526_v15  ;;  %vm918_vm13 = vcmp.eq.f32.partialorder %v2528_v2, inf }
 0x1bd   :  { %v972_v16 = vld [vmem:[#allocation3] sm:$0xff]  ;;  %v2533_v6 = vmax.f32 %v981_v48, 1e-12  ;;  %723 = vst.msk [vmem:[#allocation2 + $0x50] sm:$0xff] %vm3240_vm10, %v706_v34  ;;  %v921_v47 = vand.u32 2147483648, %v2528_v2  ;;  %vm920_vm9 = vcmp.eq.f32.partialorder %v2528_v2, 0.0 }
 0x1be   :  { %v2535_v44 = vmax.f32 %v972_v16, 1e-12  ;;  %v687_v57 = vpop.xlane.xlu0 %686  ;;  %v766_v36 = vpop.xlane.xlu1 %765  ;;  %716 = vst.msk [vmem:[#allocation2 + $0x18] sm:$0xff] %vm3241_vm3, %v699_v32  ;;  %vm3246_vm3 = vmmov %vm3242_vm2  ;;  %v634_v48 = vld [vmem:[#allocation2 + $0x10] sm:$0xff]  ;;  %v1165_v34 = vld [vmem:[%s3034_s6 + $0x8] sm:$0xff] }
 0x1bf   :  { %1416 = vrsqrt.f32 %v2533_v6  ;;  %v707_v54 = vmax.f32 %v643_v23, %v687_v57  ;;  %v795_v1 = vmin.f32 %v731_v45, %v766_v36  ;;  %vm1069_vm11 = vcmp.eq.f32.partialorder %v2533_v6, inf }
 0x1c0   :  { %1418 = vrsqrt.f32 %v2535_v44  ;;  %v980_v9 = vld [vmem:[#allocation3 + $0x40] sm:$0xff]  ;;  %vm1071_vm8 = vcmp.eq.f32.partialorder %v2533_v6, 0.0  ;;  %vm1006_vm10 = vcmp.eq.f32.partialorder %v2535_v44, inf  ;;  %v1009_v52 = vand.u32 2147483648, %v2535_v44 }
 0x1c1   :  { %v828_v14 = vld [vmem:[#allocation2] sm:$0xff]  ;;  %v2544_v20 = vmax.f32 %v980_v9, 1e-12  ;;  %724 = vst.msk [vmem:[#allocation2 + $0x58] sm:$0xff] %vm3242_vm2, %v707_v54 }
 0x1c2   :  { %v1409_v41 = vpop.eup %1408  ;;  %v768_v5 = vpop.xlane.xlu0 %767  ;;  %v2546_v58 = vmax.f32 %v828_v14, 1e-12  ;;  %811 = vst.msk [vmem:[#allocation3 + $0x10] sm:$0xff] %vm3243_vm12, %v795_v1 }
 0x1c3   :  { %v782_v25 = vpop.xlane.xlu1 %781  ;;  %v1411_v49 = vpop.eup %1410  ;;  %v868_v12 = vmul.f32 %v1409_v41, %v2520_v13  ;;  %v796_v37 = vmin.f32 %v732_v60, %v768_v5  ;;  %1420 = vrsqrt.f32 %v2544_v20  ;;  %vm1062_vm12 = vcmp.eq.f32.partialorder %v2544_v20, inf }
 0x1c4   :  { %v803_v19 = vmin.f32 %v739_v50, %v782_v25  ;;  %v924_v38 = vmul.f32 %v1411_v49, %v2518_v35  ;;  %v838_v22 = vld [vmem:[#allocation2 + $0x50] sm:$0xff]  ;;  %1422 = vrsqrt.f32 %v2546_v58 }
 0x1c5   :  { %v1413_v62 = vpop.eup %1412  ;;  %812 = vst.msk [vmem:[#allocation3 + $0x18] sm:$0xff] %vm3244_vm14, %v796_v37  ;;  %v870_v21 = vsel %vm869_vm15, %v2520_v13, %v868_v12  ;;  %v831_v30 = vld [vmem:[#allocation2 + $0x18] sm:$0xff]  ;;  %v2571_v4 = vmax.f32 %v838_v22, 1e-12  ;;  %vm1064_vm15 = vcmp.eq.f32.partialorder %v2544_v20, 0.0  ;;  %v1173_v12 = vld [vmem:[%s3034_s6 + $0x48] sm:$0xff] }
 0x1c6   :  { %v1012_v42 = vmul.f32 %v1413_v62, %v2526_v15  ;;  %819 = vst.msk [vmem:[#allocation3 + $0x50] sm:$0xff] %vm3245_vm4, %v803_v19  ;;  %v784_v43 = vpop.xlane.xlu0 %783  ;;  %v1415_v11 = vpop.eup %1414  ;;  %v2573_v26 = vmax.f32 %v831_v30, 1e-12  ;;  %v873_v53 = vsel %vm871_vm0, %v872_v59, %v870_v21  ;;  %v926_v31 = vsel %vm925_vm7, %v2518_v35, %v924_v38  ;;  %vm3247_vm7 = vmmov %vm3242_vm2 }
 0x1c7   :  { %v673_v56 = vpop.xlane.xlu1 %672  ;;  %v804_v7 = vmin.f32 %v740_v46, %v784_v43  ;;  %v917_v29 = vmul.f32 %v1415_v11, %v2528_v2  ;;  %1424 = vrsqrt.f32 %v2571_v4  ;;  %vm1008_vm2 = vcmp.eq.f32.partialorder %v2535_v44, 0.0  ;;  %vm3248_vm0 = vmmov %vm3246_vm3 }
 0x1c8   :  { %v1014_v3 = vsel %vm1013_vm6, %v2526_v15, %v1012_v42  ;;  %v700_v63 = vmax.f32 %v636_v24, %v673_v56  ;;  %v1072_v15 = vand.u32 2147483648, %v2533_v6  ;;  %v839_v51 = vld [vmem:[#allocation2 + $0x58] sm:$0xff]  ;;  %1426 = vrsqrt.f32 %v2573_v26  ;;  %vm3249_vm6 = vmmov %vm3248_vm0 }
 0x1c9   :  { %v1417_v27 = vpop.eup %1416  ;;  %v1017_v0 = vsel %vm1015_vm5, %v1016_v61, %v1014_v3  ;;  %820 = vst.msk [vmem:[#allocation3 + $0x58] sm:$0xff] %vm3246_vm3, %v804_v7  ;;  %v974_v55 = vld [vmem:[#allocation3 + $0x10] sm:$0xff]  ;;  %v929_v16 = vsel %vm927_vm1, %v928_v39, %v926_v31  ;;  %v2609_v36 = vmax.f32 %v839_v51, 1e-12  ;;  %v1065_v39 = vand.u32 2147483648, %v2544_v20  ;;  %vm3250_vm5 = vmmov %vm3248_vm0 }
 0x1ca   :  { %v1419_v17 = vpop.eup %1418  ;;  %v1117_v18 = vsub.f32 %v873_v53, %v1017_v0  ;;  %v1068_v33 = vmul.f32 %v1417_v27, %v2533_v6  ;;  %v669_v28 = vpop.xlane.xlu0 %668  ;;  %717 = vst.msk [vmem:[#allocation2 + $0x20] sm:$0xff] %vm3247_vm7, %v700_v63  ;;  %v2618_v50 = vmax.f32 %v974_v55, 1e-12  ;;  %vm862_vm1 = vcmp.eq.f32.partialorder %v2546_v58, inf  ;;  %v644_v53 = vld [vmem:[#allocation2 + $0x60] sm:$0xff]  ;;  %vm3252_vm3 = vmmov %vm3248_vm0 }
 0x1cb   :  { %v2585_v13 = vpop.xlane.xlu1 %688  ;;  %v1005_v23 = vmul.f32 %v1419_v17, %v2535_v44  ;;  %v698_v9 = vmax.f32 %v634_v48, %v669_v28  ;;  %1428 = vrsqrt.f32 %v2609_v36  ;;  %v865_v30 = vand.u32 2147483648, %v2546_v58 }
 0x1cc   :  { %v1133_v40 = vadd.f32 0.3, %v1117_v18  ;;  %v1070_v8 = vsel %vm1069_vm11, %v2533_v6, %v1068_v33  ;;  %v975_v10 = vld [vmem:[#allocation3 + $0x18] sm:$0xff]  ;;  %v919_v6 = vsel %vm918_vm13, %v2528_v2, %v917_v29  ;;  %1430 = vrsqrt.f32 %v2618_v50  ;;  %v1164_v29 = vld [vmem:[%s3034_s6] sm:$0xff] }
 0x1cd   :  { %v1073_v32 = vsel %vm1071_vm8, %v1072_v15, %v1070_v8  ;;  %v982_v60 = vld [vmem:[#allocation3 + $0x50] sm:$0xff]  ;;  %v1421_v1 = vpop.eup %1420  ;;  %v2620_v41 = vmax.f32 %v975_v10, 1e-12  ;;  %v1007_v37 = vsel %vm1006_vm10, %v2535_v44, %v1005_v23  ;;  %715 = vst.msk [vmem:[#allocation2 + $0x10] sm:$0xff] %vm3248_vm0, %v698_v9  ;;  %v922_v42 = vsel %vm920_vm9, %v921_v47, %v919_v6  ;;  %v1172_v44 = vld [vmem:[%s3034_s6 + $0x40] sm:$0xff]  ;;  %vm3251_vm10 = vmmov %vm3248_vm0 }
 0x1ce   :  { %v1149_v57 = vmax.f32 %v1133_v40, 0.0  ;;  %v1125_v45 = vsub.f32 %v929_v16, %v1073_v32  ;;  %v2611_v35 = vpop.xlane.xlu0 %674  ;;  %v1061_v25 = vmul.f32 %v1421_v1, %v2544_v20  ;;  %v1423_v49 = vpop.eup %1422  ;;  %v2632_v19 = vmax.f32 %v982_v60, 1e-12  ;;  %v637_v1 = vld [vmem:[#allocation2 + $0x28] sm:$0xff] }
 0x1cf   :  { %v2613_v54 = vpop.xlane.xlu1 %769  ;;  %v861_v46 = vmul.f32 %v1423_v49, %v2546_v58  ;;  %1432 = vrsqrt.f32 %v2620_v41  ;;  %vm864_vm14 = vcmp.eq.f32.partialorder %v2546_v58, 0.0  ;;  %v1010_v2 = vsel %vm1008_vm2, %v1009_v52, %v1007_v37  ;;  %v741_v49 = vld [vmem:[#allocation3 + $0x60] sm:$0xff] }
 0x1d0   :  { %v1181_v14 = vmul.f32 %v1165_v34, %v1149_v57  ;;  %v1141_v5 = vadd.f32 0.3, %v1125_v45  ;;  %v1063_v59 = vsel %vm1062_vm12, %v2544_v20, %v1061_v25  ;;  %v983_v11 = vld [vmem:[#allocation3 + $0x58] sm:$0xff]  ;;  %vm932_vm4 = vcmp.eq.f32.partialorder %v2571_v4, inf  ;;  %v645_v25 = vld [vmem:[#allocation2 + $0x68] sm:$0xff] }
 0x1d1   :  { %v1066_v22 = vsel %vm1064_vm15, %v1065_v39, %v1063_v59  ;;  %v863_v56 = vsel %vm862_vm1, %v2546_v58, %v861_v46  ;;  %v1425_v61 = vpop.eup %1424  ;;  %1434 = vrsqrt.f32 %v2632_v19  ;;  %v935_v7 = vand.u32 2147483648, %v2571_v4  ;;  %v832_v17 = vld [vmem:[#allocation2 + $0x20] sm:$0xff]  ;;  %v638_v59 = vld [vmem:[#allocation2 + $0x30] sm:$0xff] }
 0x1d2   :  { %1197 = vst.msk [vmem:[%s3035_s8 + $0x8] sm:$0xff] %vm3249_vm6, %v1181_v14  ;;  %v1157_v62 = vmax.f32 %v1141_v5, 0.0  ;;  %v2644_v38 = vpop.xlane.xlu0 %690  ;;  %v1124_v24 = vsub.f32 %v922_v42, %v1066_v22  ;;  %v866_v47 = vsel %vm864_vm14, %v865_v30, %v863_v56  ;;  %v1427_v20 = vpop.eup %1426  ;;  %vm883_vm13 = vcmp.eq.f32.partialorder %v2573_v26, inf  ;;  %v733_v5 = vld [vmem:[#allocation3 + $0x20] sm:$0xff]  ;;  %v639_v56 = vld [vmem:[#allocation2 + $0x38] sm:$0xff] }
 0x1d3   :  { %v2646_v21 = vpop.xlane.xlu1 %785  ;;  %v1116_v27 = vsub.f32 %v866_v47, %v1010_v2  ;;  %v882_v63 = vmul.f32 %v1427_v20, %v2573_v26  ;;  %vm885_vm11 = vcmp.eq.f32.partialorder %v2573_v26, 0.0  ;;  %v2679_v33 = vmax.f32 %v983_v11, 1e-12 }
 0x1d4   :  { %v1189_v43 = vmul.f32 %v1173_v12, %v1157_v62  ;;  %v1140_v3 = vadd.f32 0.3, %v1124_v24  ;;  %v830_v28 = vld [vmem:[#allocation2 + $0x10] sm:$0xff]  ;;  %v931_v15 = vmul.f32 %v1425_v61, %v2571_v4  ;;  %v886_v51 = vand.u32 2147483648, %v2573_v26  ;;  %v734_v62 = vld [vmem:[#allocation3 + $0x28] sm:$0xff] }
 0x1d5   :  { %v1132_v18 = vadd.f32 0.3, %v1116_v27  ;;  %v2686_v40 = vmax.f32 %v830_v28, 1e-12  ;;  %v708_v8 = vmax.f32 %v644_v53, %v2585_v13  ;;  %v1429_v52 = vpop.eup %1428  ;;  %vm939_vm9 = vcmp.eq.f32.partialorder %v2609_v36, inf  ;;  %v646_v24 = vld [vmem:[#allocation2 + $0x70] sm:$0xff] }
 0x1d6   :  { %1205 = vst.msk [vmem:[%s3035_s8 + $0x48] sm:$0xff] %vm3250_vm5, %v1189_v43  ;;  %v2668_v58 = vpop.xlane.xlu0 %771  ;;  %v1156_v31 = vmax.f32 %v1140_v3, 0.0  ;;  %1436 = vrsqrt.f32 %v2679_v33  ;;  %vm934_vm8 = vcmp.eq.f32.partialorder %v2571_v4, 0.0  ;;  %v884_v34 = vsel %vm883_vm13, %v2573_v26, %v882_v63  ;;  %v1431_v57 = vpop.eup %1430  ;;  %v742_v43 = vld [vmem:[#allocation3 + $0x68] sm:$0xff]  ;;  %v735_v3 = vld [vmem:[#allocation3 + $0x30] sm:$0xff]  ;;  %v647_v27 = vld [vmem:[#allocation2 + $0x78] sm:$0xff] }
 0x1d7   :  { %v2670_v0 = vpop.xlane.xlu1 %676  ;;  %v1148_v10 = vmax.f32 %v1132_v18, 0.0  ;;  %v938_v32 = vmul.f32 %v1429_v52, %v2609_v36  ;;  %v942_v13 = vand.u32 2147483648, %v2609_v36  ;;  %v2701_v23 = vmax.f32 %v832_v17, 1e-12  ;;  %725 = vst.msk [vmem:[#allocation2 + $0x60] sm:$0xff] %vm3251_vm10, %v708_v8  ;;  %vm3253_vm5 = vmmov %vm3248_vm0 }
 0x1d8   :  { %v1188_v55 = vmul.f32 %v1172_v44, %v1156_v31  ;;  %v1023_v60 = vand.u32 2147483648, %v2618_v50  ;;  %vm1027_vm7 = vcmp.eq.f32.partialorder %v2620_v41, inf  ;;  %vm1029_vm2 = vcmp.eq.f32.partialorder %v2620_v41, 0.0  ;;  %vm3255_vm13 = vmmov %vm3248_vm0 }
 0x1d9   :  { %v1180_v45 = vmul.f32 %v1164_v29, %v1148_v10  ;;  %v1433_v6 = vpop.eup %1432  ;;  %v933_v9 = vsel %vm932_vm4, %v2571_v4, %v931_v15  ;;  %vm941_vm12 = vcmp.eq.f32.partialorder %v2609_v36, 0.0  ;;  %vm1020_vm15 = vcmp.eq.f32.partialorder %v2618_v50, inf  ;;  %vm3254_vm4 = vmmov %vm3248_vm0 }
 0x1da   :  { %v2691_v48 = vpop.xlane.xlu0 %787  ;;  %1204 = vst.msk [vmem:[%s3035_s8 + $0x40] sm:$0xff] %vm3252_vm3, %v1188_v55  ;;  %v1030_v14 = vand.u32 2147483648, %v2620_v41  ;;  %vm1076_vm1 = vcmp.eq.f32.partialorder %v2632_v19, inf  ;;  %1438 = vrsqrt.f32 %v2686_v40  ;;  %v887_v12 = vsel %vm885_vm11, %v886_v51, %v884_v34  ;;  %vm3256_vm11 = vmmov %vm3248_vm0 }
 0x1db   :  { %v2693_v16 = vpop.xlane.xlu1 %692  ;;  %1196 = vst.msk [vmem:[%s3035_s8] sm:$0xff] %vm3248_vm0, %v1180_v45  ;;  %v1026_v37 = vmul.f32 %v1433_v6, %v2620_v41  ;;  %vm1078_vm6 = vcmp.eq.f32.partialorder %v2632_v19, 0.0  ;;  %v1079_v39 = vand.u32 2147483648, %v2632_v19  ;;  %v940_v22 = vsel %vm939_vm9, %v2609_v36, %v938_v32  ;;  %v1435_v61 = vpop.eup %1434  ;;  %vm3257_vm9 = vmmov %vm3248_vm0  ;;  %v1174_v36 = vld [vmem:[%s3034_s6 + $0x50] sm:$0xff] }
 0x1dc   :  { %v1019_v30 = vmul.f32 %v1431_v57, %v2618_v50  ;;  %1440 = vrsqrt.f32 %v2701_v23  ;;  %v701_v26 = vmax.f32 %v637_v1, %v2611_v35  ;;  %v797_v47 = vmin.f32 %v733_v5, %v2613_v54  ;;  %v743_v54 = vld [vmem:[#allocation3 + $0x70] sm:$0xff]  ;;  %vm3258_vm10 = vmmov %vm3248_vm0 }
 0x1dd   :  { %v1028_v2 = vsel %vm1027_vm7, %v2620_v41, %v1026_v37  ;;  %v709_v11 = vmax.f32 %v645_v25, %v2644_v38  ;;  %v805_v20 = vmin.f32 %v741_v49, %v2646_v21  ;;  %vm1022_vm14 = vcmp.eq.f32.partialorder %v2618_v50, 0.0  ;;  %vm3259_vm3 = vmmov %vm3248_vm0 }
 0x1de   :  { %v679_v46 = vpop.xlane.xlu0 %678  ;;  %v1031_v35 = vsel %vm1029_vm2, %v1030_v14, %v1028_v2  ;;  %v1075_v53 = vmul.f32 %v1435_v61, %v2632_v19  ;;  %718 = vst.msk [vmem:[#allocation2 + $0x28] sm:$0xff] %vm3253_vm5, %v701_v26  ;;  %v798_v44 = vmin.f32 %v734_v62, %v2668_v58  ;;  %v702_v63 = vmax.f32 %v638_v59, %v2670_v0  ;;  %v840_v38 = vld [vmem:[#allocation2 + $0x60] sm:$0xff]  ;;  %vm3260_vm7 = vmmov %vm3248_vm0 }
 0x1df   :  { %v774_v42 = vpop.xlane.xlu1 %773  ;;  %v1119_v17 = vsub.f32 %v887_v12, %v1031_v35  ;;  %813 = vst.msk [vmem:[#allocation3 + $0x20] sm:$0xff] %vm3254_vm4, %v797_v47  ;;  %v806_v41 = vmin.f32 %v742_v43, %v2691_v48  ;;  %v710_v21 = vmax.f32 %v646_v24, %v2693_v16  ;;  %v703_v31 = vmax.f32 %v639_v56, %v679_v46  ;;  %vm3261_vm2 = vmmov %vm3248_vm0  ;;  %v736_v48 = vld [vmem:[#allocation3 + $0x38] sm:$0xff] }
 0x1e0   :  { %726 = vst.msk [vmem:[#allocation2 + $0x68] sm:$0xff] %vm3255_vm13, %v709_v11  ;;  %v1077_v58 = vsel %vm1076_vm1, %v2632_v19, %v1075_v53  ;;  %v2755_v0 = vmax.f32 %v840_v38, 1e-12  ;;  %v799_v29 = vmin.f32 %v735_v3, %v774_v42  ;;  %v1437_v51 = vpop.eup %1436  ;;  %v936_v8 = vsel %vm934_vm8, %v935_v7, %v933_v9  ;;  %v1167_v16 = vld [vmem:[%s3034_s6 + $0x18] sm:$0xff]  ;;  %vm3263_vm5 = vmmov %vm3248_vm0 }
 0x1e1   :  { %821 = vst.msk [vmem:[#allocation3 + $0x60] sm:$0xff] %vm3256_vm11, %v805_v20  ;;  %v1135_v52 = vadd.f32 0.3, %v1119_v17  ;;  %v1080_v55 = vsel %vm1078_vm6, %v1079_v39, %v1077_v58  ;;  %v1082_v4 = vmul.f32 %v1437_v51, %v2679_v33  ;;  %vm1083_vm8 = vcmp.eq.f32.partialorder %v2679_v33, inf  ;;  %vm3262_vm6 = vmmov %vm3248_vm0 }
 0x1e2   :  { %v695_v18 = vpop.xlane.xlu0 %694  ;;  %814 = vst.msk [vmem:[#allocation3 + $0x28] sm:$0xff] %vm3257_vm9, %v798_v44  ;;  %v1126_v34 = vsub.f32 %v936_v8, %v1080_v55  ;;  %vm1085_vm1 = vcmp.eq.f32.partialorder %v2679_v33, 0.0  ;;  %v943_v19 = vsel %vm941_vm12, %v942_v13, %v940_v22  ;;  %v1021_v7 = vsel %vm1020_vm15, %v2618_v50, %v1019_v30  ;;  %vm3264_vm15 = vmmov %vm3248_vm0  ;;  %v1175_v50 = vld [vmem:[%s3034_s6 + $0x58] sm:$0xff] }
 0x1e3   :  { %v790_v28 = vpop.xlane.xlu1 %789  ;;  %719 = vst.msk [vmem:[#allocation2 + $0x30] sm:$0xff] %vm3258_vm10, %v702_v63  ;;  %v711_v15 = vmax.f32 %v647_v27, %v695_v18  ;;  %v1151_v32 = vmax.f32 %v1135_v52, 0.0  ;;  %v1086_v57 = vand.u32 2147483648, %v2679_v33  ;;  %v1084_v9 = vsel %vm1083_vm8, %v2679_v33, %v1082_v4  ;;  %vm3265_vm4 = vmmov %vm3248_vm0  ;;  %v1166_v27 = vld [vmem:[%s3034_s6 + $0x10] sm:$0xff] }
 0x1e4   :  { %822 = vst.msk [vmem:[#allocation3 + $0x68] sm:$0xff] %vm3259_vm3, %v806_v41  ;;  %v807_v10 = vmin.f32 %v743_v54, %v790_v28  ;;  %v1439_v1 = vpop.eup %1438  ;;  %v1142_v6 = vadd.f32 0.3, %v1126_v34  ;;  %1442 = vrsqrt.f32 %v2755_v0  ;;  %vm876_vm12 = vcmp.eq.f32.partialorder %v2686_v40, inf  ;;  %vm3267_vm11 = vmmov %vm3248_vm0  ;;  %v744_v41 = vld [vmem:[#allocation3 + $0x78] sm:$0xff] }
 0x1e5   :  { %727 = vst.msk [vmem:[#allocation2 + $0x70] sm:$0xff] %vm3260_vm7, %v710_v21  ;;  %v1183_v5 = vmul.f32 %v1167_v16, %v1151_v32  ;;  %v1087_v13 = vsel %vm1085_vm1, %v1086_v57, %v1084_v9  ;;  %v875_v25 = vmul.f32 %v1439_v1, %v2686_v40  ;;  %v833_v49 = vld [vmem:[#allocation2 + $0x28] sm:$0xff]  ;;  %v879_v62 = vand.u32 2147483648, %v2686_v40  ;;  %vm3268_vm3 = vmmov %vm3248_vm0 }
 0x1e6   :  { %720 = vst.msk [vmem:[#allocation2 + $0x38] sm:$0xff] %vm3261_vm2, %v703_v31  ;;  %v776_v45 = vpop.xlane.xlu0 %775  ;;  %v1441_v12 = vpop.eup %1440  ;;  %v1158_v37 = vmax.f32 %v1142_v6, 0.0  ;;  %v1127_v39 = vsub.f32 %v943_v19, %v1087_v13  ;;  %v2795_v59 = vmax.f32 %v833_v49, 1e-12  ;;  %v976_v46 = vld [vmem:[#allocation3 + $0x20] sm:$0xff]  ;;  %v1024_v33 = vsel %vm1022_vm14, %v1023_v60, %v1021_v7  ;;  %vm3266_vm14 = vmmov %vm3248_vm0 }
 0x1e7   :  { %815 = vst.msk [vmem:[#allocation3 + $0x30] sm:$0xff] %vm3248_vm0, %v799_v29  ;;  %v800_v14 = vmin.f32 %v736_v48, %v776_v45  ;;  %v841_v42 = vld [vmem:[#allocation2 + $0x68] sm:$0xff]  ;;  %v877_v22 = vsel %vm876_vm12, %v2686_v40, %v875_v25  ;;  %vm878_vm13 = vcmp.eq.f32.partialorder %v2686_v40, 0.0  ;;  %v2808_v30 = vmax.f32 %v976_v46, 1e-12 }
 0x1e8   :  { %728 = vst.msk [vmem:[#allocation2 + $0x78] sm:$0xff] %vm3262_vm6, %v711_v15  ;;  %v1190_v26 = vmul.f32 %v1174_v36, %v1158_v37  ;;  %v1143_v43 = vadd.f32 0.3, %v1127_v39  ;;  %v880_v24 = vsel %vm878_vm13, %v879_v62, %v877_v22  ;;  %1444 = vrsqrt.f32 %v2795_v59  ;;  %v984_v61 = vld [vmem:[#allocation3 + $0x60] sm:$0xff] }
 0x1e9   :  { %823 = vst.msk [vmem:[#allocation3 + $0x70] sm:$0xff] %vm3263_vm5, %v807_v10  ;;  %v1118_v60 = vsub.f32 %v880_v24, %v1024_v33  ;;  %v2814_v56 = vmax.f32 %v841_v42, 1e-12  ;;  %1446 = vrsqrt.f32 %v2808_v30  ;;  %v977_v2 = vld [vmem:[#allocation3 + $0x28] sm:$0xff]  ;;  %v889_v3 = vmul.f32 %v1441_v12, %v2701_v23  ;;  %vm3269_vm5 = vmmov %vm3268_vm3 }
 0x1ea   :  { %816 = vst.msk [vmem:[#allocation3 + $0x38] sm:$0xff] %vm3264_vm15, %v800_v14  ;;  %v1159_v40 = vmax.f32 %v1143_v43, 0.0  ;;  %v834_v11 = vld [vmem:[#allocation2 + $0x30] sm:$0xff]  ;;  %v2825_v35 = vmax.f32 %v984_v61, 1e-12  ;;  %vm890_vm9 = vcmp.eq.f32.partialorder %v2701_v23, inf  ;;  %v792_v21 = vpop.xlane.xlu0 %791 }
 0x1eb   :  { %1199 = vst.msk [vmem:[%s3035_s8 + $0x18] sm:$0xff] %vm3265_vm4, %v1183_v5  ;;  %v1134_v47 = vadd.f32 0.3, %v1118_v60  ;;  %1448 = vrsqrt.f32 %v2814_v56  ;;  %v2828_v44 = vmax.f32 %v977_v2, 1e-12  ;;  %v985_v17 = vld [vmem:[#allocation3 + $0x68] sm:$0xff]  ;;  %v891_v31 = vsel %vm890_vm9, %v2701_v23, %v889_v3 }
 0x1ec   :  { %1206 = vst.msk [vmem:[%s3035_s8 + $0x50] sm:$0xff] %vm3266_vm14, %v1190_v26  ;;  %v1191_v20 = vmul.f32 %v1175_v50, %v1159_v40  ;;  %1450 = vrsqrt.f32 %v2825_v35  ;;  %v2835_v54 = vmax.f32 %v834_v11, 1e-12  ;;  %vm892_vm10 = vcmp.eq.f32.partialorder %v2701_v23, 0.0  ;;  %v842_v8 = vld [vmem:[#allocation2 + $0x70] sm:$0xff]  ;;  %v1168_v43 = vld [vmem:[%s3034_s6 + $0x20] sm:$0xff] }
 0x1ed   :  { %v1150_v53 = vmax.f32 %v1134_v47, 0.0  ;;  %1452 = vrsqrt.f32 %v2828_v44  ;;  %v893_v28 = vand.u32 2147483648, %v2701_v23  ;;  %vm946_vm7 = vcmp.eq.f32.partialorder %v2755_v0, inf  ;;  %v835_v7 = vld [vmem:[#allocation2 + $0x38] sm:$0xff] }
 0x1ee   :  { %v1443_v63 = vpop.eup %1442  ;;  %1207 = vst.msk [vmem:[%s3035_s8 + $0x58] sm:$0xff] %vm3267_vm11, %v1191_v20  ;;  %v978_v18 = vld [vmem:[#allocation3 + $0x30] sm:$0xff]  ;;  %v2848_v29 = vmax.f32 %v985_v17, 1e-12  ;;  %vm948_vm2 = vcmp.eq.f32.partialorder %v2755_v0, 0.0  ;;  %v949_v51 = vand.u32 2147483648, %v2755_v0  ;;  %1454 = vrsqrt.f32 %v2835_v54 }
 0x1ef   :  { %v1182_v38 = vmul.f32 %v1166_v27, %v1150_v53  ;;  %v945_v58 = vmul.f32 %v1443_v63, %v2755_v0  ;;  %v808_v23 = vmin.f32 %v744_v41, %v792_v21  ;;  %v894_v52 = vsel %vm892_vm10, %v893_v28, %v891_v31  ;;  %v843_v46 = vld [vmem:[#allocation2 + $0x78] sm:$0xff]  ;;  %v1169_v28 = vld [vmem:[%s3034_s6 + $0x28] sm:$0xff] }
 0x1f0   :  { %vm897_vm8 = vcmp.eq.f32.partialorder %v2795_v59, inf  ;;  %1456 = vrsqrt.f32 %v2848_v29  ;;  %v2855_v55 = vmax.f32 %v978_v18, 1e-12  ;;  %vm899_vm1 = vcmp.eq.f32.partialorder %v2795_v59, 0.0  ;;  %v986_v13 = vld [vmem:[#allocation3 + $0x70] sm:$0xff] }
 0x1f1   :  { %1198 = vst.msk [vmem:[%s3035_s8 + $0x10] sm:$0xff] %vm3268_vm3, %v1182_v38  ;;  %v900_v48 = vand.u32 2147483648, %v2795_v59  ;;  %vm1034_vm0 = vcmp.eq.f32.partialorder %v2808_v30, inf  ;;  %vm1036_vm6 = vcmp.eq.f32.partialorder %v2808_v30, 0.0  ;;  %v947_v16 = vsel %vm946_vm7, %v2755_v0, %v945_v58  ;;  %v979_v47 = vld [vmem:[#allocation3 + $0x38] sm:$0xff] }
 0x1f2   :  { %v1445_v15 = vpop.eup %1444  ;;  %824 = vst.msk [vmem:[#allocation3 + $0x78] sm:$0xff] %vm3269_vm5, %v808_v23  ;;  %v2867_v19 = vmax.f32 %v842_v8, 1e-12  ;;  %v1037_v32 = vand.u32 2147483648, %v2808_v30  ;;  %vm953_vm12 = vcmp.eq.f32.partialorder %v2814_v56, inf  ;;  %v956_v57 = vand.u32 2147483648, %v2814_v56 }
 0x1f3   :  { %v1447_v10 = vpop.eup %1446  ;;  %v896_v34 = vmul.f32 %v1445_v15, %v2795_v59  ;;  %vm1090_vm15 = vcmp.eq.f32.partialorder %v2825_v35, inf  ;;  %vm1092_vm4 = vcmp.eq.f32.partialorder %v2825_v35, 0.0  ;;  %v1093_v6 = vand.u32 2147483648, %v2825_v35 }
 0x1f4   :  { %v1033_v4 = vmul.f32 %v1447_v10, %v2808_v30  ;;  %1458 = vrsqrt.f32 %v2855_v55  ;;  %v950_v14 = vsel %vm948_vm2, %v949_v51, %v947_v16  ;;  %vm955_vm13 = vcmp.eq.f32.partialorder %v2814_v56, 0.0 }
 0x1f5   :  { %v1449_v45 = vpop.eup %1448  ;;  %vm1041_vm14 = vcmp.eq.f32.partialorder %v2828_v44, inf  ;;  %v2883_v36 = vmax.f32 %v835_v7, 1e-12  ;;  %v898_v49 = vsel %vm897_vm8, %v2795_v59, %v896_v34  ;;  %1460 = vrsqrt.f32 %v2867_v19  ;;  %vm3270_vm8 = vmmov %vm3268_vm3 }
 0x1f6   :  { %v1035_v1 = vsel %vm1034_vm0, %v2808_v30, %v1033_v4  ;;  %v1451_v9 = vpop.eup %1450  ;;  %v952_v0 = vmul.f32 %v1449_v45, %v2814_v56  ;;  %vm1043_vm11 = vcmp.eq.f32.partialorder %v2828_v44, 0.0  ;;  %v1044_v62 = vand.u32 2147483648, %v2828_v44  ;;  %v1177_v4 = vld [vmem:[%s3034_s6 + $0x68] sm:$0xff] }
 0x1f7   :  { %v1038_v5 = vsel %vm1036_vm6, %v1037_v32, %v1035_v1  ;;  %v1453_v25 = vpop.eup %1452  ;;  %v1089_v37 = vmul.f32 %v1451_v9, %v2825_v35  ;;  %vm1097_vm9 = vcmp.eq.f32.partialorder %v2848_v29, inf  ;;  %v2898_v22 = vmax.f32 %v986_v13, 1e-12  ;;  %vm3271_vm6 = vmmov %vm3268_vm3 }
 0x1f8   :  { %v1120_v12 = vsub.f32 %v894_v52, %v1038_v5  ;;  %v1040_v39 = vmul.f32 %v1453_v25, %v2828_v44  ;;  %v1455_v30 = vpop.eup %1454  ;;  %v901_v26 = vsel %vm899_vm1, %v900_v48, %v898_v49  ;;  %1462 = vrsqrt.f32 %v2883_v36  ;;  %v1170_v49 = vld [vmem:[%s3034_s6 + $0x30] sm:$0xff] }
 0x1f9   :  { %v1091_v33 = vsel %vm1090_vm15, %v2825_v35, %v1089_v37  ;;  %v2913_v2 = vmax.f32 %v843_v46, 1e-12  ;;  %v954_v11 = vsel %vm953_vm12, %v2814_v56, %v952_v0  ;;  %v1100_v27 = vand.u32 2147483648, %v2848_v29  ;;  %v987_v8 = vld [vmem:[#allocation3 + $0x78] sm:$0xff]  ;;  %vm3272_vm12 = vmmov %vm3268_vm3 }
 0x1fa   :  { %v1136_v42 = vadd.f32 0.3, %v1120_v12  ;;  %v1094_v24 = vsel %vm1092_vm4, %v1093_v6, %v1091_v33  ;;  %v1042_v50 = vsel %vm1041_vm14, %v2828_v44, %v1040_v39  ;;  %v1457_v60 = vpop.eup %1456  ;;  %v903_v63 = vmul.f32 %v1455_v30, %v2835_v54  ;;  %v1176_v44 = vld [vmem:[%s3034_s6 + $0x60] sm:$0xff] }
 0x1fb   :  { %v1128_v40 = vsub.f32 %v950_v14, %v1094_v24  ;;  %v1045_v59 = vsel %vm1043_vm11, %v1044_v62, %v1042_v50  ;;  %v1096_v3 = vmul.f32 %v1457_v60, %v2848_v29  ;;  %1464 = vrsqrt.f32 %v2898_v22  ;;  %vm3273_vm11 = vmmov %vm3268_vm3 }
 0x1fc   :  { %v1152_v61 = vmax.f32 %v1136_v42, 0.0  ;;  %v1121_v20 = vsub.f32 %v901_v26, %v1045_v59  ;;  %vm1099_vm10 = vcmp.eq.f32.partialorder %v2848_v29, 0.0  ;;  %v2929_v41 = vmax.f32 %v979_v47, 1e-12  ;;  %v1178_v47 = vld [vmem:[%s3034_s6 + $0x70] sm:$0xff] }
 0x1fd   :  { %v1144_v53 = vadd.f32 0.3, %v1128_v40  ;;  %v1098_v38 = vsel %vm1097_vm9, %v2848_v29, %v1096_v3  ;;  %v957_v31 = vsel %vm955_vm13, %v956_v57, %v954_v11  ;;  %1466 = vrsqrt.f32 %v2913_v2 }
 0x1fe   :  { %v1184_v35 = vmul.f32 %v1168_v43, %v1152_v61  ;;  %v1137_v17 = vadd.f32 0.3, %v1121_v20  ;;  %v1459_v21 = vpop.eup %1458  ;;  %v1101_v58 = vsel %vm1099_vm10, %v1100_v27, %v1098_v38  ;;  %vm904_vm7 = vcmp.eq.f32.partialorder %v2835_v54, inf }
 0x1ff   :  { %v1160_v18 = vmax.f32 %v1144_v53, 0.0  ;;  %v907_v15 = vand.u32 2147483648, %v2835_v54  ;;  %v1129_v51 = vsub.f32 %v957_v31, %v1101_v58  ;;  %v1461_v23 = vpop.eup %1460  ;;  %v905_v56 = vsel %vm904_vm7, %v2835_v54, %v903_v63  ;;  %v1171_v31 = vld [vmem:[%s3034_s6 + $0x38] sm:$0xff] }
 0x200   :  { %1200 = vst.msk [vmem:[%s3035_s8 + $0x20] sm:$0xff] %vm3268_vm3, %v1184_v35  ;;  %v1153_v29 = vmax.f32 %v1137_v17, 0.0  ;;  %v1047_v10 = vmul.f32 %v1459_v21, %v2855_v55  ;;  %vm1048_vm2 = vcmp.eq.f32.partialorder %v2855_v55, inf  ;;  %v1051_v34 = vand.u32 2147483648, %v2855_v55 }
 0x201   :  { %v1192_v52 = vmul.f32 %v1176_v44, %v1160_v18  ;;  %v1145_v16 = vadd.f32 0.3, %v1129_v51  ;;  %1468 = vrsqrt.f32 %v2929_v41  ;;  %vm906_vm1 = vcmp.eq.f32.partialorder %v2835_v54, 0.0 }
 0x202   :  { %v1185_v48 = vmul.f32 %v1169_v28, %v1153_v29  ;;  %v1049_v7 = vsel %vm1048_vm2, %v2855_v55, %v1047_v10  ;;  %vm1050_vm0 = vcmp.eq.f32.partialorder %v2855_v55, 0.0  ;;  %v2958_v32 = vmax.f32 %v987_v8, 1e-12  ;;  %v1463_v57 = vpop.eup %1462  ;;  %v1179_v29 = vld [vmem:[%s3034_s6 + $0x78] sm:$0xff] }
 0x203   :  { %1208 = vst.msk [vmem:[%s3035_s8 + $0x60] sm:$0xff] %vm3270_vm8, %v1192_v52  ;;  %v908_v45 = vsel %vm906_vm1, %v907_v15, %v905_v56  ;;  %v1161_v1 = vmax.f32 %v1145_v16, 0.0  ;;  %v959_v54 = vmul.f32 %v1461_v23, %v2867_v19  ;;  %v1052_v6 = vsel %vm1050_vm0, %v1051_v34, %v1049_v7  ;;  %vm3274_vm0 = vmmov %vm3271_vm6 }
 0x204   :  { %1201 = vst.msk [vmem:[%s3035_s8 + $0x28] sm:$0xff] %vm3271_vm6, %v1185_v48  ;;  %v1122_v9 = vsub.f32 %v908_v45, %v1052_v6  ;;  %1470 = vrsqrt.f32 %v2958_v32  ;;  %vm960_vm5 = vcmp.eq.f32.partialorder %v2867_v19, inf  ;;  %v910_v25 = vmul.f32 %v1463_v57, %v2883_v36  ;;  %vm3275_vm6 = vmmov %vm3274_vm0 }
 0x205   :  { %v1193_v14 = vmul.f32 %v1177_v4, %v1161_v1  ;;  %v1465_v5 = vpop.eup %1464  ;;  %v961_v13 = vsel %vm960_vm5, %v2867_v19, %v959_v54  ;;  %v963_v0 = vand.u32 2147483648, %v2867_v19  ;;  %vm1104_vm15 = vcmp.eq.f32.partialorder %v2898_v22, inf  ;;  %vm3276_vm5 = vmmov %vm3274_vm0 }
 0x206   :  { %v1138_v55 = vadd.f32 0.3, %v1122_v9  ;;  %v1103_v12 = vmul.f32 %v1465_v5, %v2898_v22  ;;  %v1107_v62 = vand.u32 2147483648, %v2898_v22  ;;  %vm962_vm4 = vcmp.eq.f32.partialorder %v2867_v19, 0.0 }
 0x207   :  { %1209 = vst.msk [vmem:[%s3035_s8 + $0x68] sm:$0xff] %vm3272_vm12, %v1193_v14  ;;  %v1467_v37 = vpop.eup %1466  ;;  %vm1106_vm13 = vcmp.eq.f32.partialorder %v2898_v22, 0.0  ;;  %v964_v42 = vsel %vm962_vm4, %v963_v0, %v961_v13  ;;  %vm911_vm14 = vcmp.eq.f32.partialorder %v2883_v36, inf  ;;  %v914_v60 = vand.u32 2147483648, %v2883_v36 }
 0x208   :  { %v1154_v39 = vmax.f32 %v1138_v55, 0.0  ;;  %v1105_v46 = vsel %vm1104_vm15, %v2898_v22, %v1103_v12  ;;  %v912_v43 = vsel %vm911_vm14, %v2883_v36, %v910_v25  ;;  %v966_v24 = vmul.f32 %v1467_v37, %v2913_v2 }
 0x209   :  { %v1108_v30 = vsel %vm1106_vm13, %v1107_v62, %v1105_v46  ;;  %vm913_vm9 = vcmp.eq.f32.partialorder %v2883_v36, 0.0  ;;  %vm1055_vm10 = vcmp.eq.f32.partialorder %v2929_v41, inf  ;;  %v1058_v61 = vand.u32 2147483648, %v2929_v41 }
 0x20a   :  { %v1186_v33 = vmul.f32 %v1170_v49, %v1154_v39  ;;  %v1130_v50 = vsub.f32 %v964_v42, %v1108_v30  ;;  %v915_v59 = vsel %vm913_vm9, %v914_v60, %v912_v43  ;;  %vm967_vm3 = vcmp.eq.f32.partialorder %v2913_v2, inf }
 0x20b   :  { %v1469_v26 = vpop.eup %1468  ;;  %vm1057_vm7 = vcmp.eq.f32.partialorder %v2929_v41, 0.0  ;;  %v968_v20 = vsel %vm967_vm3, %v2913_v2, %v966_v24  ;;  %v970_v35 = vand.u32 2147483648, %v2913_v2  ;;  %vm1111_vm2 = vcmp.eq.f32.partialorder %v2958_v32, inf }
 0x20c   :  { %1202 = vst.msk [vmem:[%s3035_s8 + $0x30] sm:$0xff] %vm3273_vm11, %v1186_v33  ;;  %v1054_v19 = vmul.f32 %v1469_v26, %v2929_v41  ;;  %v1146_v22 = vadd.f32 0.3, %v1130_v50  ;;  %v1114_v63 = vand.u32 2147483648, %v2958_v32  ;;  %vm969_vm8 = vcmp.eq.f32.partialorder %v2913_v2, 0.0 }
 0x20d   :  { %vm1113_vm1 = vcmp.eq.f32.partialorder %v2958_v32, 0.0  ;;  %v971_v38 = vsel %vm969_vm8, %v970_v35, %v968_v20 }
 0x20e   :  { %v1471_v40 = vpop.eup %1470  ;;  %v1056_v11 = vsel %vm1055_vm10, %v2929_v41, %v1054_v19  ;;  %v1162_v36 = vmax.f32 %v1146_v22, 0.0 }
 0x20f   :  { %v1059_v3 = vsel %vm1057_vm7, %v1058_v61, %v1056_v11  ;;  %v1110_v27 = vmul.f32 %v1471_v40, %v2958_v32 }
 0x210   :  { %v1123_v53 = vsub.f32 %v915_v59, %v1059_v3  ;;  %v1194_v44 = vmul.f32 %v1178_v47, %v1162_v36 }
 0x211   :  { %v1112_v17 = vsel %vm1111_vm2, %v2958_v32, %v1110_v27 }
 0x212   :  { %v1139_v41 = vadd.f32 0.3, %v1123_v53  ;;  %v1115_v21 = vsel %vm1113_vm1, %v1114_v63, %v1112_v17  ;;  %1210 = vst.msk [vmem:[%s3035_s8 + $0x70] sm:$0xff] %vm3274_vm0, %v1194_v44 }
 0x213   :  { %v1131_v18 = vsub.f32 %v971_v38, %v1115_v21 }
 0x214   :  { %v1155_v28 = vmax.f32 %v1139_v41, 0.0 }
 0x215   :  { %v1147_v2 = vadd.f32 0.3, %v1131_v18 }
 0x216   :  { %v1187_v58 = vmul.f32 %v1171_v31, %v1155_v28 }
 0x217   :  { %v1163_v15 = vmax.f32 %v1147_v2, 0.0 }
 0x218   :  { %1203 = vst.msk [vmem:[%s3035_s8 + $0x38] sm:$0xff] %vm3275_vm6, %v1187_v58 }
 0x219   :  { %v1195_v51 = vmul.f32 %v1179_v29, %v1163_v15 }
 0x21b   :  { %1211 = vst.msk [vmem:[%s3035_s8 + $0x78] sm:$0xff] %vm3276_vm5, %v1195_v51 }

</bundles_post_ra>
